<compile_context>
chip_gen: v6e
topology: v6e:2x2x1
jax: 0.10.0
libtpu: 0.0.40
codegen_flags: <defaults>
</compile_context>

<pallas_src>
import functools
import math

import jax
import jax.numpy as jnp
from jax import lax
from jax.experimental import pallas as pl
from jax.experimental.pallas import tpu as pltpu

EPS = 1e-6        # annotated-transformer LayerNorm eps (added to std, not var)
NEG_INF = -1e9    # masked_fill value


# ------------------------- in-kernel helper functions -------------------------

def _layernorm_f32(x, g, b):
    """x: (T, D); g, b: (1, D). Stats in f32, unbiased std (n-1), eps added to std (torch .std())."""
    xf = x.astype(jnp.float32)
    n = xf.shape[-1]
    mean = jnp.mean(xf, axis=-1, keepdims=True)
    var = jnp.sum((xf - mean) ** 2, axis=-1, keepdims=True) * (1.0 / (n - 1))
    std = jnp.sqrt(var)
    return g.astype(jnp.float32) * (xf - mean) / (std + EPS) + b.astype(jnp.float32)


def _mha_core(q, k, v, mask, *, heads, compute_dtype):
    """q: (Tq, D), k/v: (Tk, D) (f32 accumulators), mask: (1|Tq, Tk) -> (Tq, D) f32.

    Head split/merge stays on the VMEM tile (no HBM transposes). Softmax in f32,
    matmul operands cast back to compute_dtype (bf16-ready), f32 accumulation."""
    Tq, D = q.shape
    dk = D // heads
    scale = 1.0 / math.sqrt(dk)
    qc = (q * scale).astype(compute_dtype)     # fold 1/sqrt(dk) into q once
    kc = k.astype(compute_dtype)
    vc = v.astype(compute_dtype)
    masked = (mask == 0)                       # (1|Tq, Tk) predicate computed once, shared by heads
    outs = []
    for h in range(heads):                     # static unroll; all heads stay resident in VMEM
        sl = slice(h * dk, (h + 1) * dk)
        s = lax.dot_general(qc[:, sl], kc[:, sl], (((1,), (1,)), ((), ())),
                            preferred_element_type=jnp.float32)          # (Tq, Tk)
        s = jnp.where(masked, jnp.float32(NEG_INF), s)                   # masked_fill(mask==0, -1e9)
        s = s - jnp.max(s, axis=-1, keepdims=True)
        p = jnp.exp(s)
        p = p * pl.reciprocal(jnp.sum(p, axis=-1, keepdims=True), approx=True)
        outs.append(jnp.dot(p.astype(compute_dtype), vc[:, sl],
                            preferred_element_type=jnp.float32))          # (Tq, dk)
    return jnp.concatenate(outs, axis=-1)                                 # (Tq, D)


# ------------------------------- Pallas kernels --------------------------------

def _self_attn_sublayer_kernel(x_ref, mask_ref, g_ref, b_ref,
                               wqkv_ref, bqkv_ref, wo_ref, bo_ref,
                               o_ref, *, heads):
    """One batch element: residual + out_proj(MHA(LN(x) @ [Wq|Wk|Wv]))."""
    x = x_ref[0]                                          # (T, D)
    D = x.shape[-1]
    y = _layernorm_f32(x, g_ref[...], b_ref[...])         # (T, D) f32
    qkv = jnp.dot(y.astype(wqkv_ref.dtype), wqkv_ref[...],
                  preferred_element_type=jnp.float32) + bqkv_ref[...].astype(jnp.float32)
    attn = _mha_core(qkv[:, :D], qkv[:, D:2 * D], qkv[:, 2 * D:], mask_ref[0],
                     heads=heads, compute_dtype=x.dtype)
    out = jnp.dot(attn.astype(wo_ref.dtype), wo_ref[...],
                  preferred_element_type=jnp.float32) + bo_ref[...].astype(jnp.float32)
    o_ref[0] = (x.astype(jnp.float32) + out).astype(o_ref.dtype)


def _cross_attn_sublayer_kernel(x_ref, mem_ref, mask_ref, g_ref, b_ref,
                                wq_ref, bq_ref, wkv_ref, bkv_ref, wo_ref, bo_ref,
                                o_ref, *, heads):
    """One batch element: residual + out_proj(MHA(LN(x) Wq, memory [Wk|Wv]))."""
    x = x_ref[0]                                          # (Tq, D)
    mem = mem_ref[0]                                      # (Tk, D)   NOT layer-normalized (spec)
    D = x.shape[-1]
    y = _layernorm_f32(x, g_ref[...], b_ref[...])
    q = jnp.dot(y.astype(wq_ref.dtype), wq_ref[...],
                preferred_element_type=jnp.float32) + bq_ref[...].astype(jnp.float32)
    kv = jnp.dot(mem.astype(wkv_ref.dtype), wkv_ref[...],
                 preferred_element_type=jnp.float32) + bkv_ref[...].astype(jnp.float32)
    attn = _mha_core(q, kv[:, :D], kv[:, D:], mask_ref[0],
                     heads=heads, compute_dtype=x.dtype)
    out = jnp.dot(attn.astype(wo_ref.dtype), wo_ref[...],
                  preferred_element_type=jnp.float32) + bo_ref[...].astype(jnp.float32)
    o_ref[0] = (x.astype(jnp.float32) + out).astype(o_ref.dtype)


def _ffn_sublayer_kernel(x_ref, g_ref, b_ref, w1_ref, b1_ref, w2_ref, b2_ref, o_ref):
    """Row tile: residual + W2(relu(W1(LN(x)))); the (tm, d_ff) intermediate never leaves VMEM."""
    x = x_ref[...]                                        # (tm, D)
    y = _layernorm_f32(x, g_ref[...], b_ref[...])
    h = jnp.dot(y.astype(w1_ref.dtype), w1_ref[...],
                preferred_element_type=jnp.float32) + b1_ref[...].astype(jnp.float32)
    h = jnp.maximum(h, 0.0)
    out = jnp.dot(h.astype(w2_ref.dtype), w2_ref[...],
                  preferred_element_type=jnp.float32) + b2_ref[...].astype(jnp.float32)
    o_ref[...] = (x.astype(jnp.float32) + out).astype(o_ref.dtype)


# ------------------------------- Pallas wrappers --------------------------------

def _full2d(d0, d1):
    """Whole-array 2D block (weights / biases / LN params): fetched once, constant index map."""
    return pl.BlockSpec((d0, d1), lambda *_: (0, 0))


def _bytes(*arrays):
    return int(sum(a.size * a.dtype.itemsize for a in arrays))


def self_attn_sublayer(x, mask, ln, p, heads):
    B, T, D = x.shape
    Tm = mask.shape[1]                                     # 1 or T (broadcast handled in-kernel)
    # One-time weight fusion (O(D^2), negligible next to the O(B*T*D^2) matmuls).
    wqkv = jnp.concatenate([p["wq"], p["wk"], p["wv"]], axis=1)            # (D, 3D)
    bqkv = jnp.concatenate([p["bq"], p["bk"], p["bv"]]).reshape(1, 3 * D)
    cost = pl.CostEstimate(
        flops=int(2 * B * T * D * 4 * D + 4 * B * T * T * D),
        transcendentals=int(B * heads * T * (T + 1)),
        bytes_accessed=_bytes(x, mask, wqkv, p["wo"]) + _bytes(x))
    kern = functools.partial(_self_attn_sublayer_kernel, heads=heads)
    return pl.pallas_call(
        kern,
        out_shape=jax.ShapeDtypeStruct((B, T, D), x.dtype),
        grid=(B,),
        in_specs=[pl.BlockSpec((1, T, D), lambda b: (b, 0, 0)),
                  pl.BlockSpec((1, Tm, T), lambda b: (b, 0, 0)),
                  _full2d(1, D), _full2d(1, D),
                  _full2d(D, 3 * D), _full2d(1, 3 * D),
                  _full2d(D, D), _full2d(1, D)],
        out_specs=pl.BlockSpec((1, T, D), lambda b: (b, 0, 0)),
        compiler_params=pltpu.CompilerParams(dimension_semantics=("parallel",)),
        cost_estimate=cost,
    )(x, mask, ln["g"].reshape(1, D), ln["b"].reshape(1, D),
      wqkv, bqkv, p["wo"], p["bo"].reshape(1, D))


def cross_attn_sublayer(x, memory, mask, ln, p, heads):
    B, Tq, D = x.shape
    Tk = memory.shape[1]
    Tm = mask.shape[1]
    wkv = jnp.concatenate([p["wk"], p["wv"]], axis=1)                      # (D, 2D)
    bkv = jnp.concatenate([p["bk"], p["bv"]]).reshape(1, 2 * D)
    cost = pl.CostEstimate(
        flops=int(2 * B * (Tq * D * D + Tk * D * 2 * D + Tq * D * D) + 4 * B * Tq * Tk * D),
        transcendentals=int(B * heads * Tq * (Tk + 1)),
        bytes_accessed=_bytes(x, memory, mask, p["wq"], wkv, p["wo"]) + _bytes(x))
    kern = functools.partial(_cross_attn_sublayer_kernel, heads=heads)
    return pl.pallas_call(
        kern,
        out_shape=jax.ShapeDtypeStruct((B, Tq, D), x.dtype),
        grid=(B,),
        in_specs=[pl.BlockSpec((1, Tq, D), lambda b: (b, 0, 0)),
                  pl.BlockSpec((1, Tk, D), lambda b: (b, 0, 0)),
                  pl.BlockSpec((1, Tm, Tk), lambda b: (b, 0, 0)),
                  _full2d(1, D), _full2d(1, D),
                  _full2d(D, D), _full2d(1, D),
                  _full2d(D, 2 * D), _full2d(1, 2 * D),
                  _full2d(D, D), _full2d(1, D)],
        out_specs=pl.BlockSpec((1, Tq, D), lambda b: (b, 0, 0)),
        compiler_params=pltpu.CompilerParams(dimension_semantics=("parallel",)),
        cost_estimate=cost,
    )(x, memory, mask, ln["g"].reshape(1, D), ln["b"].reshape(1, D),
      p["wq"], p["bq"].reshape(1, D), wkv, bkv, p["wo"], p["bo"].reshape(1, D))


def _row_tile(n):
    """Largest sublane-aligned row tile that still yields >= 2 grid steps (megacore sharding)."""
    for t in (512, 256, 128, 64, 32, 16, 8):
        if n % t == 0 and n // t >= 2:
            return t
    return n


def ffn_sublayer(x, ln, p):
    B, T, D = x.shape
    d_ff = p["w1"].shape[1]
    N = B * T
    x2 = x.reshape(N, D)
    tm = _row_tile(N)
    cost = pl.CostEstimate(
        flops=int(4 * N * D * d_ff),
        transcendentals=0,
        bytes_accessed=_bytes(x2, p["w1"], p["w2"]) + _bytes(x2))
    out = pl.pallas_call(
        _ffn_sublayer_kernel,
        out_shape=jax.ShapeDtypeStruct((N, D), x.dtype),
        grid=(N // tm,),
        in_specs=[pl.BlockSpec((tm, D), lambda i: (i, 0)),
                  _full2d(1, D), _full2d(1, D),
                  _full2d(D, d_ff), _full2d(1, d_ff),
                  _full2d(d_ff, D), _full2d(1, D)],
        out_specs=pl.BlockSpec((tm, D), lambda i: (i, 0)),
        compiler_params=pltpu.CompilerParams(dimension_semantics=("parallel",)),
        cost_estimate=cost,
    )(x2, ln["g"].reshape(1, D), ln["b"].reshape(1, D),
      p["w1"], p["b1"].reshape(1, d_ff), p["w2"], p["b2"].reshape(1, D))
    return out.reshape(B, T, D)


def decoder_layer_forward(params, x, memory, source_mask, target_mask, heads):
    x = self_attn_sublayer(x, target_mask, params["ln"][0], params["self_attn"], heads)
    x = cross_attn_sublayer(x, memory, source_mask, params["ln"][1], params["src_attn"], heads)
    x = ffn_sublayer(x, params["ln"][2], params["ff"])
    return x


# ------------------------------- parameter init --------------------------------

def _linear_params(key, din, dout):
    kw, kb = jax.random.split(key)
    bound = 1.0 / math.sqrt(din)
    w = jax.random.uniform(kw, (din, dout), jnp.float32, -bound, bound)
    b = jax.random.uniform(kb, (dout,), jnp.float32, -bound, bound)
    return w, b


def make_params(key, d_model, d_ff):
    keys = jax.random.split(key, 10)

    def mha_params(k):
        ks = jax.random.split(k, 4)
        wq, bq = _linear_params(ks[0], d_model, d_model)
        wk, bk = _linear_params(ks[1], d_model, d_model)
        wv, bv = _linear_params(ks[2], d_model, d_model)
        wo, bo = _linear_params(ks[3], d_model, d_model)
        return dict(wq=wq, bq=bq, wk=wk, bk=bk, wv=wv, bv=bv, wo=wo, bo=bo)

    w1, b1 = _linear_params(keys[2], d_model, d_ff)
    w2, b2 = _linear_params(keys[3], d_ff, d_model)
    ln = [dict(g=jnp.ones((d_model,), jnp.float32),
               b=jnp.zeros((d_model,), jnp.float32)) for _ in range(3)]
    return dict(self_attn=mha_params(keys[0]),
                src_attn=mha_params(keys[1]),
                ff=dict(w1=w1, b1=b1, w2=w2, b2=b2),
                ln=ln)


# --------------------------- plain-JAX reference (check) ---------------------------

def _reference_forward(params, x, memory, source_mask, target_mask, heads):
    def ln(z, g, b):
        mean = jnp.mean(z, axis=-1, keepdims=True)
        var = jnp.sum((z - mean) ** 2, axis=-1, keepdims=True) / (z.shape[-1] - 1)
        return g * (z - mean) / (jnp.sqrt(var) + EPS) + b

    def mha(xq, xkv, mask, p):
        B, Tq, D = xq.shape
        Tk = xkv.shape[1]
        dk = D // heads
        q = (xq @ p["wq"] + p["bq"]).reshape(B, Tq, heads, dk).transpose(0, 2, 1, 3)
        k = (xkv @ p["wk"] + p["bk"]).reshape(B, Tk, heads, dk).transpose(0, 2, 1, 3)
        v = (xkv @ p["wv"] + p["bv"]).reshape(B, Tk, heads, dk).transpose(0, 2, 1, 3)
        s = jnp.einsum("bhqd,bhkd->bhqk", q, k) / math.sqrt(dk)
        s = jnp.where(mask[:, None] == 0, NEG_INF, s)
        pa = jax.nn.softmax(s, axis=-1)
        o = jnp.einsum("bhqk,bhkd->bhqd", pa, v).transpose(0, 2, 1, 3).reshape(B, Tq, D)
        return o @ p["wo"] + p["bo"]

    lns = params["ln"]
    y0 = ln(x, lns[0]["g"], lns[0]["b"])
    x = x + mha(y0, y0, target_mask, params["self_attn"])
    x = x + mha(ln(x, lns[1]["g"], lns[1]["b"]), memory, source_mask, params["src_attn"])
    y2 = ln(x, lns[2]["g"], lns[2]["b"])
    x = x + (jnp.maximum(y2 @ params["ff"]["w1"] + params["ff"]["b1"], 0.0)
             @ params["ff"]["w2"] + params["ff"]["b2"])
    return x


# ------------------------------------- main -------------------------------------

if __name__ == "__main__":
    B, T_tgt, T_src, D, H, D_FF = 2, 8, 8, 32, 4, 64

    key = jax.random.PRNGKey(0)
    k_x, k_m, k_p = jax.random.split(key, 3)

    x = jax.random.normal(k_x, (B, T_tgt, D), jnp.float32)
    memory = jax.random.normal(k_m, (B, T_src, D), jnp.float32)

    # source mask: (B, 1, T_src) all-ones padding mask; target mask: (B, T_tgt, T_tgt) causal.
    source_mask = jnp.ones((B, 1, T_src), jnp.float32)
    target_mask = jnp.broadcast_to(
        jnp.tril(jnp.ones((T_tgt, T_tgt), jnp.float32))[None], (B, T_tgt, T_tgt))

    params = make_params(k_p, D, D_FF)

    fwd = jax.jit(functools.partial(decoder_layer_forward, heads=H))
    out = jax.block_until_ready(fwd(params, x, memory, source_mask, target_mask))

    assert out.shape == (B, T_tgt, D)
    assert bool(jnp.all(jnp.isfinite(out)))

    ref = _reference_forward(params, x, memory, source_mask, target_mask, H)
    max_err = float(jnp.max(jnp.abs(out - ref)))
    assert max_err < 1e-1, f"mismatch vs plain-JAX reference: {max_err}"

    print("KERNEL_OK")
</pallas_src>

<mosaic_0001>
module attributes {stable_mosaic.version = 11 : i64} {
  func.func @_self_attn_sublayer_kernel(%arg0: i32, %arg1: memref<1x8x32xf32, #tpu.memory_space<vmem>>, %arg2: memref<1x8x8xf32, #tpu.memory_space<vmem>>, %arg3: memref<1x32xf32, #tpu.memory_space<vmem>>, %arg4: memref<1x32xf32, #tpu.memory_space<vmem>>, %arg5: memref<32x96xf32, #tpu.memory_space<vmem>>, %arg6: memref<1x96xf32, #tpu.memory_space<vmem>>, %arg7: memref<32x32xf32, #tpu.memory_space<vmem>>, %arg8: memref<1x32xf32, #tpu.memory_space<vmem>>, %arg9: memref<1x8x32xf32, #tpu.memory_space<vmem>>) attributes {dimension_semantics = [#tpu.dimension_semantics<parallel>], iteration_bounds = array<i64: 2>, scalar_prefetch = 0 : i64, scratch_operands = 0 : i64, tpu.core_type = #tpu.core_type<tc>, window_params = [{transform_indices = @transform_0, window_bounds = array<i64: 1, 8, 32>}, {transform_indices = @transform_1, window_bounds = array<i64: 1, 8, 8>}, {pipeline_mode = #tpu.pipeline_mode<synchronous>, transform_indices = @transform_2, window_bounds = array<i64: 1, 32>}, {pipeline_mode = #tpu.pipeline_mode<synchronous>, transform_indices = @transform_3, window_bounds = array<i64: 1, 32>}, {pipeline_mode = #tpu.pipeline_mode<synchronous>, transform_indices = @transform_4, window_bounds = array<i64: 32, 96>}, {pipeline_mode = #tpu.pipeline_mode<synchronous>, transform_indices = @transform_5, window_bounds = array<i64: 1, 96>}, {pipeline_mode = #tpu.pipeline_mode<synchronous>, transform_indices = @transform_6, window_bounds = array<i64: 32, 32>}, {pipeline_mode = #tpu.pipeline_mode<synchronous>, transform_indices = @transform_7, window_bounds = array<i64: 1, 32>}, {transform_indices = @transform_8, window_bounds = array<i64: 1, 8, 32>}]} {
    %c0 = arith.constant 0 : index
    %c0_0 = arith.constant 0 : index
    %c0_1 = arith.constant 0 : index
    %0 = vector.load %arg1[%c0, %c0_0, %c0_1] : memref<1x8x32xf32, #tpu.memory_space<vmem>>, vector<1x8x32xf32>
    %1 = vector.shape_cast %0 : vector<1x8x32xf32> to vector<8x32xf32>
    %c0_2 = arith.constant 0 : index
    %c0_3 = arith.constant 0 : index
    %2 = vector.load %arg3[%c0_2, %c0_3] : memref<1x32xf32, #tpu.memory_space<vmem>>, vector<1x32xf32>
    %c0_4 = arith.constant 0 : index
    %c0_5 = arith.constant 0 : index
    %3 = vector.load %arg4[%c0_4, %c0_5] : memref<1x32xf32, #tpu.memory_space<vmem>>, vector<1x32xf32>
    %cst = arith.constant dense<0.000000e+00> : vector<8xf32>
    %4 = vector.multi_reduction <add>, %1, %cst [1] : vector<8x32xf32> to vector<8xf32>
    %5 = vector.shape_cast %4 : vector<8xf32> to vector<8x1xf32>
    %cst_6 = arith.constant 3.200000e+01 : f32
    %6 = vector.broadcast %cst_6 : f32 to vector<8x1xf32>
    %7 = arith.divf %5, %6 : vector<8x1xf32>
    %8 = vector.broadcast %7 : vector<8x1xf32> to vector<8x32xf32>
    %9 = arith.subf %1, %8 : vector<8x32xf32>
    %10 = arith.mulf %9, %9 : vector<8x32xf32>
    %cst_7 = arith.constant dense<0.000000e+00> : vector<8xf32>
    %11 = vector.multi_reduction <add>, %10, %cst_7 [1] : vector<8x32xf32> to vector<8xf32>
    %12 = vector.shape_cast %11 : vector<8xf32> to vector<8x1xf32>
    %cst_8 = arith.constant 0.0322580636 : f32
    %13 = vector.broadcast %cst_8 : f32 to vector<8x1xf32>
    %14 = arith.mulf %12, %13 : vector<8x1xf32>
    %15 = math.sqrt %14 : vector<8x1xf32>
    %16 = vector.broadcast %7 : vector<8x1xf32> to vector<8x32xf32>
    %17 = arith.subf %1, %16 : vector<8x32xf32>
    %18 = vector.broadcast %2 : vector<1x32xf32> to vector<8x32xf32>
    %19 = arith.mulf %18, %17 : vector<8x32xf32>
    %cst_9 = arith.constant 9.99999997E-7 : f32
    %20 = vector.broadcast %cst_9 : f32 to vector<8x1xf32>
    %21 = arith.addf %15, %20 : vector<8x1xf32>
    %22 = vector.broadcast %21 : vector<8x1xf32> to vector<8x32xf32>
    %23 = arith.divf %19, %22 : vector<8x32xf32>
    %24 = vector.broadcast %3 : vector<1x32xf32> to vector<8x32xf32>
    %25 = arith.addf %23, %24 : vector<8x32xf32>
    %c0_10 = arith.constant 0 : index
    %c0_11 = arith.constant 0 : index
    %26 = vector.load %arg5[%c0_10, %c0_11] : memref<32x96xf32, #tpu.memory_space<vmem>>, vector<32x96xf32>
    %cst_12 = arith.constant dense<0.000000e+00> : vector<8x96xf32>
    %27 = tpu.matmul %25, %26, %cst_12 {dimension_numbers = #tpu.dot_dimension_numbers<[1], [0], [0], [1], [0, 0, 1, 1], [], []>} : vector<8x32xf32>, vector<32x96xf32>, vector<8x96xf32> -> vector<8x96xf32>
    %c0_13 = arith.constant 0 : index
    %c0_14 = arith.constant 0 : index
    %28 = vector.load %arg6[%c0_13, %c0_14] : memref<1x96xf32, #tpu.memory_space<vmem>>, vector<1x96xf32>
    %29 = vector.broadcast %28 : vector<1x96xf32> to vector<8x96xf32>
    %30 = arith.addf %27, %29 : vector<8x96xf32>
    %31 = vector.extract_strided_slice %30 {offsets = [0, 0], sizes = [8, 32], strides = [1, 1]} : vector<8x96xf32> to vector<8x32xf32>
    %32 = vector.extract_strided_slice %30 {offsets = [0, 32], sizes = [8, 32], strides = [1, 1]} : vector<8x96xf32> to vector<8x32xf32>
    %33 = vector.extract_strided_slice %30 {offsets = [0, 64], sizes = [8, 32], strides = [1, 1]} : vector<8x96xf32> to vector<8x32xf32>
    %c0_15 = arith.constant 0 : index
    %c0_16 = arith.constant 0 : index
    %c0_17 = arith.constant 0 : index
    %34 = vector.load %arg2[%c0_15, %c0_16, %c0_17] : memref<1x8x8xf32, #tpu.memory_space<vmem>>, vector<1x8x8xf32>
    %35 = vector.shape_cast %34 : vector<1x8x8xf32> to vector<8x8xf32>
    %cst_18 = arith.constant 0.353553385 : f32
    %36 = vector.broadcast %cst_18 : f32 to vector<8x32xf32>
    %37 = arith.mulf %31, %36 : vector<8x32xf32>
    %cst_19 = arith.constant 0.000000e+00 : f32
    %38 = vector.broadcast %cst_19 : f32 to vector<8x8xf32>
    %39 = arith.cmpf oeq, %35, %38 : vector<8x8xf32>
    %40 = vector.extract_strided_slice %37 {offsets = [0, 0], sizes = [8, 8], strides = [1, 1]} : vector<8x32xf32> to vector<8x8xf32>
    %41 = vector.extract_strided_slice %32 {offsets = [0, 0], sizes = [8, 8], strides = [1, 1]} : vector<8x32xf32> to vector<8x8xf32>
    %cst_20 = arith.constant dense<0.000000e+00> : vector<8x8xf32>
    %42 = tpu.matmul %40, %41, %cst_20 {dimension_numbers = #tpu.dot_dimension_numbers<[1], [1], [0], [0], [0, 0, 1, 0], [], []>} : vector<8x8xf32>, vector<8x8xf32>, vector<8x8xf32> -> vector<8x8xf32>
    %cst_21 = arith.constant -1.000000e+09 : f32
    %43 = vector.broadcast %cst_21 : f32 to vector<8x8xf32>
    %44 = arith.select %39, %43, %42 : vector<8x8xi1>, vector<8x8xf32>
    %cst_22 = arith.constant dense<0xFF800000> : vector<8xf32>
    %45 = vector.multi_reduction <maximumf>, %44, %cst_22 [1] : vector<8x8xf32> to vector<8xf32>
    %46 = vector.shape_cast %45 : vector<8xf32> to vector<8x1xf32>
    %47 = vector.broadcast %46 : vector<8x1xf32> to vector<8x8xf32>
    %48 = arith.subf %44, %47 : vector<8x8xf32>
    %49 = math.exp %48 : vector<8x8xf32>
    %cst_23 = arith.constant dense<0.000000e+00> : vector<8xf32>
    %50 = vector.multi_reduction <add>, %49, %cst_23 [1] : vector<8x8xf32> to vector<8xf32>
    %51 = vector.shape_cast %50 : vector<8xf32> to vector<8x1xf32>
    %52 = tpu.reciprocal %51 {approx = true} : vector<8x1xf32> -> vector<8x1xf32>
    %53 = vector.broadcast %52 : vector<8x1xf32> to vector<8x8xf32>
    %54 = arith.mulf %49, %53 : vector<8x8xf32>
    %55 = vector.extract_strided_slice %33 {offsets = [0, 0], sizes = [8, 8], strides = [1, 1]} : vector<8x32xf32> to vector<8x8xf32>
    %cst_24 = arith.constant dense<0.000000e+00> : vector<8x8xf32>
    %56 = tpu.matmul %54, %55, %cst_24 {dimension_numbers = #tpu.dot_dimension_numbers<[1], [0], [0], [1], [0, 0, 1, 1], [], []>} : vector<8x8xf32>, vector<8x8xf32>, vector<8x8xf32> -> vector<8x8xf32>
    %57 = vector.extract_strided_slice %37 {offsets = [0, 8], sizes = [8, 8], strides = [1, 1]} : vector<8x32xf32> to vector<8x8xf32>
    %58 = vector.extract_strided_slice %32 {offsets = [0, 8], sizes = [8, 8], strides = [1, 1]} : vector<8x32xf32> to vector<8x8xf32>
    %cst_25 = arith.constant dense<0.000000e+00> : vector<8x8xf32>
    %59 = tpu.matmul %57, %58, %cst_25 {dimension_numbers = #tpu.dot_dimension_numbers<[1], [1], [0], [0], [0, 0, 1, 0], [], []>} : vector<8x8xf32>, vector<8x8xf32>, vector<8x8xf32> -> vector<8x8xf32>
    %cst_26 = arith.constant -1.000000e+09 : f32
    %60 = vector.broadcast %cst_26 : f32 to vector<8x8xf32>
    %61 = arith.select %39, %60, %59 : vector<8x8xi1>, vector<8x8xf32>
    %cst_27 = arith.constant dense<0xFF800000> : vector<8xf32>
    %62 = vector.multi_reduction <maximumf>, %61, %cst_27 [1] : vector<8x8xf32> to vector<8xf32>
    %63 = vector.shape_cast %62 : vector<8xf32> to vector<8x1xf32>
    %64 = vector.broadcast %63 : vector<8x1xf32> to vector<8x8xf32>
    %65 = arith.subf %61, %64 : vector<8x8xf32>
    %66 = math.exp %65 : vector<8x8xf32>
    %cst_28 = arith.constant dense<0.000000e+00> : vector<8xf32>
    %67 = vector.multi_reduction <add>, %66, %cst_28 [1] : vector<8x8xf32> to vector<8xf32>
    %68 = vector.shape_cast %67 : vector<8xf32> to vector<8x1xf32>
    %69 = tpu.reciprocal %68 {approx = true} : vector<8x1xf32> -> vector<8x1xf32>
    %70 = vector.broadcast %69 : vector<8x1xf32> to vector<8x8xf32>
    %71 = arith.mulf %66, %70 : vector<8x8xf32>
    %72 = vector.extract_strided_slice %33 {offsets = [0, 8], sizes = [8, 8], strides = [1, 1]} : vector<8x32xf32> to vector<8x8xf32>
    %cst_29 = arith.constant dense<0.000000e+00> : vector<8x8xf32>
    %73 = tpu.matmul %71, %72, %cst_29 {dimension_numbers = #tpu.dot_dimension_numbers<[1], [0], [0], [1], [0, 0, 1, 1], [], []>} : vector<8x8xf32>, vector<8x8xf32>, vector<8x8xf32> -> vector<8x8xf32>
    %74 = vector.extract_strided_slice %37 {offsets = [0, 16], sizes = [8, 8], strides = [1, 1]} : vector<8x32xf32> to vector<8x8xf32>
    %75 = vector.extract_strided_slice %32 {offsets = [0, 16], sizes = [8, 8], strides = [1, 1]} : vector<8x32xf32> to vector<8x8xf32>
    %cst_30 = arith.constant dense<0.000000e+00> : vector<8x8xf32>
    %76 = tpu.matmul %74, %75, %cst_30 {dimension_numbers = #tpu.dot_dimension_numbers<[1], [1], [0], [0], [0, 0, 1, 0], [], []>} : vector<8x8xf32>, vector<8x8xf32>, vector<8x8xf32> -> vector<8x8xf32>
    %cst_31 = arith.constant -1.000000e+09 : f32
    %77 = vector.broadcast %cst_31 : f32 to vector<8x8xf32>
    %78 = arith.select %39, %77, %76 : vector<8x8xi1>, vector<8x8xf32>
    %cst_32 = arith.constant dense<0xFF800000> : vector<8xf32>
    %79 = vector.multi_reduction <maximumf>, %78, %cst_32 [1] : vector<8x8xf32> to vector<8xf32>
    %80 = vector.shape_cast %79 : vector<8xf32> to vector<8x1xf32>
    %81 = vector.broadcast %80 : vector<8x1xf32> to vector<8x8xf32>
    %82 = arith.subf %78, %81 : vector<8x8xf32>
    %83 = math.exp %82 : vector<8x8xf32>
    %cst_33 = arith.constant dense<0.000000e+00> : vector<8xf32>
    %84 = vector.multi_reduction <add>, %83, %cst_33 [1] : vector<8x8xf32> to vector<8xf32>
    %85 = vector.shape_cast %84 : vector<8xf32> to vector<8x1xf32>
    %86 = tpu.reciprocal %85 {approx = true} : vector<8x1xf32> -> vector<8x1xf32>
    %87 = vector.broadcast %86 : vector<8x1xf32> to vector<8x8xf32>
    %88 = arith.mulf %83, %87 : vector<8x8xf32>
    %89 = vector.extract_strided_slice %33 {offsets = [0, 16], sizes = [8, 8], strides = [1, 1]} : vector<8x32xf32> to vector<8x8xf32>
    %cst_34 = arith.constant dense<0.000000e+00> : vector<8x8xf32>
    %90 = tpu.matmul %88, %89, %cst_34 {dimension_numbers = #tpu.dot_dimension_numbers<[1], [0], [0], [1], [0, 0, 1, 1], [], []>} : vector<8x8xf32>, vector<8x8xf32>, vector<8x8xf32> -> vector<8x8xf32>
    %91 = vector.extract_strided_slice %37 {offsets = [0, 24], sizes = [8, 8], strides = [1, 1]} : vector<8x32xf32> to vector<8x8xf32>
    %92 = vector.extract_strided_slice %32 {offsets = [0, 24], sizes = [8, 8], strides = [1, 1]} : vector<8x32xf32> to vector<8x8xf32>
    %cst_35 = arith.constant dense<0.000000e+00> : vector<8x8xf32>
    %93 = tpu.matmul %91, %92, %cst_35 {dimension_numbers = #tpu.dot_dimension_numbers<[1], [1], [0], [0], [0, 0, 1, 0], [], []>} : vector<8x8xf32>, vector<8x8xf32>, vector<8x8xf32> -> vector<8x8xf32>
    %cst_36 = arith.constant -1.000000e+09 : f32
    %94 = vector.broadcast %cst_36 : f32 to vector<8x8xf32>
    %95 = arith.select %39, %94, %93 : vector<8x8xi1>, vector<8x8xf32>
    %cst_37 = arith.constant dense<0xFF800000> : vector<8xf32>
    %96 = vector.multi_reduction <maximumf>, %95, %cst_37 [1] : vector<8x8xf32> to vector<8xf32>
    %97 = vector.shape_cast %96 : vector<8xf32> to vector<8x1xf32>
    %98 = vector.broadcast %97 : vector<8x1xf32> to vector<8x8xf32>
    %99 = arith.subf %95, %98 : vector<8x8xf32>
    %100 = math.exp %99 : vector<8x8xf32>
    %cst_38 = arith.constant dense<0.000000e+00> : vector<8xf32>
    %101 = vector.multi_reduction <add>, %100, %cst_38 [1] : vector<8x8xf32> to vector<8xf32>
    %102 = vector.shape_cast %101 : vector<8xf32> to vector<8x1xf32>
    %103 = tpu.reciprocal %102 {approx = true} : vector<8x1xf32> -> vector<8x1xf32>
    %104 = vector.broadcast %103 : vector<8x1xf32> to vector<8x8xf32>
    %105 = arith.mulf %100, %104 : vector<8x8xf32>
    %106 = vector.extract_strided_slice %33 {offsets = [0, 24], sizes = [8, 8], strides = [1, 1]} : vector<8x32xf32> to vector<8x8xf32>
    %cst_39 = arith.constant dense<0.000000e+00> : vector<8x8xf32>
    %107 = tpu.matmul %105, %106, %cst_39 {dimension_numbers = #tpu.dot_dimension_numbers<[1], [0], [0], [1], [0, 0, 1, 1], [], []>} : vector<8x8xf32>, vector<8x8xf32>, vector<8x8xf32> -> vector<8x8xf32>
    %108 = tpu.concatenate %56, %73, %90, %107 in 1 : vector<8x8xf32>, vector<8x8xf32>, vector<8x8xf32>, vector<8x8xf32> -> vector<8x32xf32>
    %c0_40 = arith.constant 0 : index
    %c0_41 = arith.constant 0 : index
    %109 = vector.load %arg7[%c0_40, %c0_41] : memref<32x32xf32, #tpu.memory_space<vmem>>, vector<32x32xf32>
    %cst_42 = arith.constant dense<0.000000e+00> : vector<8x32xf32>
    %110 = tpu.matmul %108, %109, %cst_42 {dimension_numbers = #tpu.dot_dimension_numbers<[1], [0], [0], [1], [0, 0, 1, 1], [], []>} : vector<8x32xf32>, vector<32x32xf32>, vector<8x32xf32> -> vector<8x32xf32>
    %c0_43 = arith.constant 0 : index
    %c0_44 = arith.constant 0 : index
    %111 = vector.load %arg8[%c0_43, %c0_44] : memref<1x32xf32, #tpu.memory_space<vmem>>, vector<1x32xf32>
    %112 = vector.broadcast %111 : vector<1x32xf32> to vector<8x32xf32>
    %113 = arith.addf %110, %112 : vector<8x32xf32>
    %114 = arith.addf %1, %113 : vector<8x32xf32>
    %c0_45 = arith.constant 0 : index
    %c0_46 = arith.constant 0 : index
    %c0_47 = arith.constant 0 : index
    %115 = vector.load %arg9[%c0_45, %c0_46, %c0_47] : memref<1x8x32xf32, #tpu.memory_space<vmem>>, vector<1x8x32xf32>
    %116 = vector.shape_cast %115 : vector<1x8x32xf32> to vector<8x32xf32>
    %117 = vector.shape_cast %114 : vector<8x32xf32> to vector<1x8x32xf32>
    tpu.vector_store %arg9[%c0_45, %c0_46, %c0_47], %117 {strides = array<i32>} : memref<1x8x32xf32, #tpu.memory_space<vmem>>, vector<1x8x32xf32>,
    return
  }
  func.func @transform_0(%arg0: i32) -> (i32, i32, i32) {
    %c0_i32 = arith.constant 0 : i32
    %c0_i32_0 = arith.constant 0 : i32
    %c0_i32_1 = arith.constant 0 : i32
    return %arg0, %c0_i32, %c0_i32_0 : i32, i32, i32
  }
  func.func @transform_1(%arg0: i32) -> (i32, i32, i32) {
    %c0_i32 = arith.constant 0 : i32
    %c0_i32_0 = arith.constant 0 : i32
    %c0_i32_1 = arith.constant 0 : i32
    return %arg0, %c0_i32, %c0_i32_0 : i32, i32, i32
  }
  func.func @transform_2(%arg0: i32) -> (i32, i32) {
    %c0_i32 = arith.constant 0 : i32
    %c0_i32_0 = arith.constant 0 : i32
    %c0_i32_1 = arith.constant 0 : i32
    return %c0_i32, %c0_i32_0 : i32, i32
  }
  func.func @transform_3(%arg0: i32) -> (i32, i32) {
    %c0_i32 = arith.constant 0 : i32
    %c0_i32_0 = arith.constant 0 : i32
    %c0_i32_1 = arith.constant 0 : i32
    return %c0_i32, %c0_i32_0 : i32, i32
  }
  func.func @transform_4(%arg0: i32) -> (i32, i32) {
    %c0_i32 = arith.constant 0 : i32
    %c0_i32_0 = arith.constant 0 : i32
    %c0_i32_1 = arith.constant 0 : i32
    return %c0_i32, %c0_i32_0 : i32, i32
  }
  func.func @transform_5(%arg0: i32) -> (i32, i32) {
    %c0_i32 = arith.constant 0 : i32
    %c0_i32_0 = arith.constant 0 : i32
    %c0_i32_1 = arith.constant 0 : i32
    return %c0_i32, %c0_i32_0 : i32, i32
  }
  func.func @transform_6(%arg0: i32) -> (i32, i32) {
    %c0_i32 = arith.constant 0 : i32
    %c0_i32_0 = arith.constant 0 : i32
    %c0_i32_1 = arith.constant 0 : i32
    return %c0_i32, %c0_i32_0 : i32, i32
  }
  func.func @transform_7(%arg0: i32) -> (i32, i32) {
    %c0_i32 = arith.constant 0 : i32
    %c0_i32_0 = arith.constant 0 : i32
    %c0_i32_1 = arith.constant 0 : i32
    return %c0_i32, %c0_i32_0 : i32, i32
  }
  func.func @transform_8(%arg0: i32) -> (i32, i32, i32) {
    %c0_i32 = arith.constant 0 : i32
    %c0_i32_0 = arith.constant 0 : i32
    %c0_i32_1 = arith.constant 0 : i32
    return %arg0, %c0_i32, %c0_i32_0 : i32, i32, i32
  }
}

module attributes {stable_mosaic.version = 11 : i64} {
  func.func @_cross_attn_sublayer_kernel(%arg0: i32, %arg1: memref<1x8x32xf32, #tpu.memory_space<vmem>>, %arg2: memref<1x8x32xf32, #tpu.memory_space<vmem>>, %arg3: memref<1x1x8xf32, #tpu.memory_space<vmem>>, %arg4: memref<1x32xf32, #tpu.memory_space<vmem>>, %arg5: memref<1x32xf32, #tpu.memory_space<vmem>>, %arg6: memref<32x32xf32, #tpu.memory_space<vmem>>, %arg7: memref<1x32xf32, #tpu.memory_space<vmem>>, %arg8: memref<32x64xf32, #tpu.memory_space<vmem>>, %arg9: memref<1x64xf32, #tpu.memory_space<vmem>>, %arg10: memref<32x32xf32, #tpu.memory_space<vmem>>, %arg11: memref<1x32xf32, #tpu.memory_space<vmem>>, %arg12: memref<1x8x32xf32, #tpu.memory_space<vmem>>) attributes {dimension_semantics = [#tpu.dimension_semantics<parallel>], iteration_bounds = array<i64: 2>, scalar_prefetch = 0 : i64, scratch_operands = 0 : i64, tpu.core_type = #tpu.core_type<tc>, window_params = [{transform_indices = @transform_0, window_bounds = array<i64: 1, 8, 32>}, {transform_indices = @transform_1, window_bounds = array<i64: 1, 8, 32>}, {transform_indices = @transform_2, window_bounds = array<i64: 1, 1, 8>}, {pipeline_mode = #tpu.pipeline_mode<synchronous>, transform_indices = @transform_3, window_bounds = array<i64: 1, 32>}, {pipeline_mode = #tpu.pipeline_mode<synchronous>, transform_indices = @transform_4, window_bounds = array<i64: 1, 32>}, {pipeline_mode = #tpu.pipeline_mode<synchronous>, transform_indices = @transform_5, window_bounds = array<i64: 32, 32>}, {pipeline_mode = #tpu.pipeline_mode<synchronous>, transform_indices = @transform_6, window_bounds = array<i64: 1, 32>}, {pipeline_mode = #tpu.pipeline_mode<synchronous>, transform_indices = @transform_7, window_bounds = array<i64: 32, 64>}, {pipeline_mode = #tpu.pipeline_mode<synchronous>, transform_indices = @transform_8, window_bounds = array<i64: 1, 64>}, {pipeline_mode = #tpu.pipeline_mode<synchronous>, transform_indices = @transform_9, window_bounds = array<i64: 32, 32>}, {pipeline_mode = #tpu.pipeline_mode<synchronous>, transform_indices = @transform_10, window_bounds = array<i64: 1, 32>}, {transform_indices = @transform_11, window_bounds = array<i64: 1, 8, 32>}]} {
    %c0 = arith.constant 0 : index
    %c0_0 = arith.constant 0 : index
    %c0_1 = arith.constant 0 : index
    %0 = vector.load %arg1[%c0, %c0_0, %c0_1] : memref<1x8x32xf32, #tpu.memory_space<vmem>>, vector<1x8x32xf32>
    %1 = vector.shape_cast %0 : vector<1x8x32xf32> to vector<8x32xf32>
    %c0_2 = arith.constant 0 : index
    %c0_3 = arith.constant 0 : index
    %c0_4 = arith.constant 0 : index
    %2 = vector.load %arg2[%c0_2, %c0_3, %c0_4] : memref<1x8x32xf32, #tpu.memory_space<vmem>>, vector<1x8x32xf32>
    %3 = vector.shape_cast %2 : vector<1x8x32xf32> to vector<8x32xf32>
    %c0_5 = arith.constant 0 : index
    %c0_6 = arith.constant 0 : index
    %4 = vector.load %arg4[%c0_5, %c0_6] : memref<1x32xf32, #tpu.memory_space<vmem>>, vector<1x32xf32>
    %c0_7 = arith.constant 0 : index
    %c0_8 = arith.constant 0 : index
    %5 = vector.load %arg5[%c0_7, %c0_8] : memref<1x32xf32, #tpu.memory_space<vmem>>, vector<1x32xf32>
    %cst = arith.constant dense<0.000000e+00> : vector<8xf32>
    %6 = vector.multi_reduction <add>, %1, %cst [1] : vector<8x32xf32> to vector<8xf32>
    %7 = vector.shape_cast %6 : vector<8xf32> to vector<8x1xf32>
    %cst_9 = arith.constant 3.200000e+01 : f32
    %8 = vector.broadcast %cst_9 : f32 to vector<8x1xf32>
    %9 = arith.divf %7, %8 : vector<8x1xf32>
    %10 = vector.broadcast %9 : vector<8x1xf32> to vector<8x32xf32>
    %11 = arith.subf %1, %10 : vector<8x32xf32>
    %12 = arith.mulf %11, %11 : vector<8x32xf32>
    %cst_10 = arith.constant dense<0.000000e+00> : vector<8xf32>
    %13 = vector.multi_reduction <add>, %12, %cst_10 [1] : vector<8x32xf32> to vector<8xf32>
    %14 = vector.shape_cast %13 : vector<8xf32> to vector<8x1xf32>
    %cst_11 = arith.constant 0.0322580636 : f32
    %15 = vector.broadcast %cst_11 : f32 to vector<8x1xf32>
    %16 = arith.mulf %14, %15 : vector<8x1xf32>
    %17 = math.sqrt %16 : vector<8x1xf32>
    %18 = vector.broadcast %9 : vector<8x1xf32> to vector<8x32xf32>
    %19 = arith.subf %1, %18 : vector<8x32xf32>
    %20 = vector.broadcast %4 : vector<1x32xf32> to vector<8x32xf32>
    %21 = arith.mulf %20, %19 : vector<8x32xf32>
    %cst_12 = arith.constant 9.99999997E-7 : f32
    %22 = vector.broadcast %cst_12 : f32 to vector<8x1xf32>
    %23 = arith.addf %17, %22 : vector<8x1xf32>
    %24 = vector.broadcast %23 : vector<8x1xf32> to vector<8x32xf32>
    %25 = arith.divf %21, %24 : vector<8x32xf32>
    %26 = vector.broadcast %5 : vector<1x32xf32> to vector<8x32xf32>
    %27 = arith.addf %25, %26 : vector<8x32xf32>
    %c0_13 = arith.constant 0 : index
    %c0_14 = arith.constant 0 : index
    %28 = vector.load %arg6[%c0_13, %c0_14] : memref<32x32xf32, #tpu.memory_space<vmem>>, vector<32x32xf32>
    %cst_15 = arith.constant dense<0.000000e+00> : vector<8x32xf32>
    %29 = tpu.matmul %27, %28, %cst_15 {dimension_numbers = #tpu.dot_dimension_numbers<[1], [0], [0], [1], [0, 0, 1, 1], [], []>} : vector<8x32xf32>, vector<32x32xf32>, vector<8x32xf32> -> vector<8x32xf32>
    %c0_16 = arith.constant 0 : index
    %c0_17 = arith.constant 0 : index
    %30 = vector.load %arg7[%c0_16, %c0_17] : memref<1x32xf32, #tpu.memory_space<vmem>>, vector<1x32xf32>
    %31 = vector.broadcast %30 : vector<1x32xf32> to vector<8x32xf32>
    %32 = arith.addf %29, %31 : vector<8x32xf32>
    %c0_18 = arith.constant 0 : index
    %c0_19 = arith.constant 0 : index
    %33 = vector.load %arg8[%c0_18, %c0_19] : memref<32x64xf32, #tpu.memory_space<vmem>>, vector<32x64xf32>
    %cst_20 = arith.constant dense<0.000000e+00> : vector<8x64xf32>
    %34 = tpu.matmul %3, %33, %cst_20 {dimension_numbers = #tpu.dot_dimension_numbers<[1], [0], [0], [1], [0, 0, 1, 1], [], []>} : vector<8x32xf32>, vector<32x64xf32>, vector<8x64xf32> -> vector<8x64xf32>
    %c0_21 = arith.constant 0 : index
    %c0_22 = arith.constant 0 : index
    %35 = vector.load %arg9[%c0_21, %c0_22] : memref<1x64xf32, #tpu.memory_space<vmem>>, vector<1x64xf32>
    %36 = vector.broadcast %35 : vector<1x64xf32> to vector<8x64xf32>
    %37 = arith.addf %34, %36 : vector<8x64xf32>
    %38 = vector.extract_strided_slice %37 {offsets = [0, 0], sizes = [8, 32], strides = [1, 1]} : vector<8x64xf32> to vector<8x32xf32>
    %39 = vector.extract_strided_slice %37 {offsets = [0, 32], sizes = [8, 32], strides = [1, 1]} : vector<8x64xf32> to vector<8x32xf32>
    %c0_23 = arith.constant 0 : index
    %c0_24 = arith.constant 0 : index
    %c0_25 = arith.constant 0 : index
    %40 = vector.load %arg3[%c0_23, %c0_24, %c0_25] : memref<1x1x8xf32, #tpu.memory_space<vmem>>, vector<1x1x8xf32>
    %41 = vector.shape_cast %40 : vector<1x1x8xf32> to vector<1x8xf32>
    %cst_26 = arith.constant 0.353553385 : f32
    %42 = vector.broadcast %cst_26 : f32 to vector<8x32xf32>
    %43 = arith.mulf %32, %42 : vector<8x32xf32>
    %cst_27 = arith.constant 0.000000e+00 : f32
    %44 = vector.broadcast %cst_27 : f32 to vector<1x8xf32>
    %45 = arith.cmpf oeq, %41, %44 : vector<1x8xf32>
    %46 = vector.extract_strided_slice %43 {offsets = [0, 0], sizes = [8, 8], strides = [1, 1]} : vector<8x32xf32> to vector<8x8xf32>
    %47 = vector.extract_strided_slice %38 {offsets = [0, 0], sizes = [8, 8], strides = [1, 1]} : vector<8x32xf32> to vector<8x8xf32>
    %cst_28 = arith.constant dense<0.000000e+00> : vector<8x8xf32>
    %48 = tpu.matmul %46, %47, %cst_28 {dimension_numbers = #tpu.dot_dimension_numbers<[1], [1], [0], [0], [0, 0, 1, 0], [], []>} : vector<8x8xf32>, vector<8x8xf32>, vector<8x8xf32> -> vector<8x8xf32>
    %cst_29 = arith.constant -1.000000e+09 : f32
    %49 = vector.shape_cast %45 : vector<1x8xi1> to vector<1x8xi1>
    %50 = vector.broadcast %49 : vector<1x8xi1> to vector<8x8xi1>
    %51 = vector.broadcast %cst_29 : f32 to vector<8x8xf32>
    %52 = arith.select %50, %51, %48 : vector<8x8xi1>, vector<8x8xf32>
    %cst_30 = arith.constant dense<0xFF800000> : vector<8xf32>
    %53 = vector.multi_reduction <maximumf>, %52, %cst_30 [1] : vector<8x8xf32> to vector<8xf32>
    %54 = vector.shape_cast %53 : vector<8xf32> to vector<8x1xf32>
    %55 = vector.broadcast %54 : vector<8x1xf32> to vector<8x8xf32>
    %56 = arith.subf %52, %55 : vector<8x8xf32>
    %57 = math.exp %56 : vector<8x8xf32>
    %cst_31 = arith.constant dense<0.000000e+00> : vector<8xf32>
    %58 = vector.multi_reduction <add>, %57, %cst_31 [1] : vector<8x8xf32> to vector<8xf32>
    %59 = vector.shape_cast %58 : vector<8xf32> to vector<8x1xf32>
    %60 = tpu.reciprocal %59 {approx = true} : vector<8x1xf32> -> vector<8x1xf32>
    %61 = vector.broadcast %60 : vector<8x1xf32> to vector<8x8xf32>
    %62 = arith.mulf %57, %61 : vector<8x8xf32>
    %63 = vector.extract_strided_slice %39 {offsets = [0, 0], sizes = [8, 8], strides = [1, 1]} : vector<8x32xf32> to vector<8x8xf32>
    %cst_32 = arith.constant dense<0.000000e+00> : vector<8x8xf32>
    %64 = tpu.matmul %62, %63, %cst_32 {dimension_numbers = #tpu.dot_dimension_numbers<[1], [0], [0], [1], [0, 0, 1, 1], [], []>} : vector<8x8xf32>, vector<8x8xf32>, vector<8x8xf32> -> vector<8x8xf32>
    %65 = vector.extract_strided_slice %43 {offsets = [0, 8], sizes = [8, 8], strides = [1, 1]} : vector<8x32xf32> to vector<8x8xf32>
    %66 = vector.extract_strided_slice %38 {offsets = [0, 8], sizes = [8, 8], strides = [1, 1]} : vector<8x32xf32> to vector<8x8xf32>
    %cst_33 = arith.constant dense<0.000000e+00> : vector<8x8xf32>
    %67 = tpu.matmul %65, %66, %cst_33 {dimension_numbers = #tpu.dot_dimension_numbers<[1], [1], [0], [0], [0, 0, 1, 0], [], []>} : vector<8x8xf32>, vector<8x8xf32>, vector<8x8xf32> -> vector<8x8xf32>
    %cst_34 = arith.constant -1.000000e+09 : f32
    %68 = vector.shape_cast %45 : vector<1x8xi1> to vector<1x8xi1>
    %69 = vector.broadcast %68 : vector<1x8xi1> to vector<8x8xi1>
    %70 = vector.broadcast %cst_34 : f32 to vector<8x8xf32>
    %71 = arith.select %69, %70, %67 : vector<8x8xi1>, vector<8x8xf32>
    %cst_35 = arith.constant dense<0xFF800000> : vector<8xf32>
    %72 = vector.multi_reduction <maximumf>, %71, %cst_35 [1] : vector<8x8xf32> to vector<8xf32>
    %73 = vector.shape_cast %72 : vector<8xf32> to vector<8x1xf32>
    %74 = vector.broadcast %73 : vector<8x1xf32> to vector<8x8xf32>
    %75 = arith.subf %71, %74 : vector<8x8xf32>
    %76 = math.exp %75 : vector<8x8xf32>
    %cst_36 = arith.constant dense<0.000000e+00> : vector<8xf32>
    %77 = vector.multi_reduction <add>, %76, %cst_36 [1] : vector<8x8xf32> to vector<8xf32>
    %78 = vector.shape_cast %77 : vector<8xf32> to vector<8x1xf32>
    %79 = tpu.reciprocal %78 {approx = true} : vector<8x1xf32> -> vector<8x1xf32>
    %80 = vector.broadcast %79 : vector<8x1xf32> to vector<8x8xf32>
    %81 = arith.mulf %76, %80 : vector<8x8xf32>
    %82 = vector.extract_strided_slice %39 {offsets = [0, 8], sizes = [8, 8], strides = [1, 1]} : vector<8x32xf32> to vector<8x8xf32>
    %cst_37 = arith.constant dense<0.000000e+00> : vector<8x8xf32>
    %83 = tpu.matmul %81, %82, %cst_37 {dimension_numbers = #tpu.dot_dimension_numbers<[1], [0], [0], [1], [0, 0, 1, 1], [], []>} : vector<8x8xf32>, vector<8x8xf32>, vector<8x8xf32> -> vector<8x8xf32>
    %84 = vector.extract_strided_slice %43 {offsets = [0, 16], sizes = [8, 8], strides = [1, 1]} : vector<8x32xf32> to vector<8x8xf32>
    %85 = vector.extract_strided_slice %38 {offsets = [0, 16], sizes = [8, 8], strides = [1, 1]} : vector<8x32xf32> to vector<8x8xf32>
    %cst_38 = arith.constant dense<0.000000e+00> : vector<8x8xf32>
    %86 = tpu.matmul %84, %85, %cst_38 {dimension_numbers = #tpu.dot_dimension_numbers<[1], [1], [0], [0], [0, 0, 1, 0], [], []>} : vector<8x8xf32>, vector<8x8xf32>, vector<8x8xf32> -> vector<8x8xf32>
    %cst_39 = arith.constant -1.000000e+09 : f32
    %87 = vector.shape_cast %45 : vector<1x8xi1> to vector<1x8xi1>
    %88 = vector.broadcast %87 : vector<1x8xi1> to vector<8x8xi1>
    %89 = vector.broadcast %cst_39 : f32 to vector<8x8xf32>
    %90 = arith.select %88, %89, %86 : vector<8x8xi1>, vector<8x8xf32>
    %cst_40 = arith.constant dense<0xFF800000> : vector<8xf32>
    %91 = vector.multi_reduction <maximumf>, %90, %cst_40 [1] : vector<8x8xf32> to vector<8xf32>
    %92 = vector.shape_cast %91 : vector<8xf32> to vector<8x1xf32>
    %93 = vector.broadcast %92 : vector<8x1xf32> to vector<8x8xf32>
    %94 = arith.subf %90, %93 : vector<8x8xf32>
    %95 = math.exp %94 : vector<8x8xf32>
    %cst_41 = arith.constant dense<0.000000e+00> : vector<8xf32>
    %96 = vector.multi_reduction <add>, %95, %cst_41 [1] : vector<8x8xf32> to vector<8xf32>
    %97 = vector.shape_cast %96 : vector<8xf32> to vector<8x1xf32>
    %98 = tpu.reciprocal %97 {approx = true} : vector<8x1xf32> -> vector<8x1xf32>
    %99 = vector.broadcast %98 : vector<8x1xf32> to vector<8x8xf32>
    %100 = arith.mulf %95, %99 : vector<8x8xf32>
    %101 = vector.extract_strided_slice %39 {offsets = [0, 16], sizes = [8, 8], strides = [1, 1]} : vector<8x32xf32> to vector<8x8xf32>
    %cst_42 = arith.constant dense<0.000000e+00> : vector<8x8xf32>
    %102 = tpu.matmul %100, %101, %cst_42 {dimension_numbers = #tpu.dot_dimension_numbers<[1], [0], [0], [1], [0, 0, 1, 1], [], []>} : vector<8x8xf32>, vector<8x8xf32>, vector<8x8xf32> -> vector<8x8xf32>
    %103 = vector.extract_strided_slice %43 {offsets = [0, 24], sizes = [8, 8], strides = [1, 1]} : vector<8x32xf32> to vector<8x8xf32>
    %104 = vector.extract_strided_slice %38 {offsets = [0, 24], sizes = [8, 8], strides = [1, 1]} : vector<8x32xf32> to vector<8x8xf32>
    %cst_43 = arith.constant dense<0.000000e+00> : vector<8x8xf32>
    %105 = tpu.matmul %103, %104, %cst_43 {dimension_numbers = #tpu.dot_dimension_numbers<[1], [1], [0], [0], [0, 0, 1, 0], [], []>} : vector<8x8xf32>, vector<8x8xf32>, vector<8x8xf32> -> vector<8x8xf32>
    %cst_44 = arith.constant -1.000000e+09 : f32
    %106 = vector.shape_cast %45 : vector<1x8xi1> to vector<1x8xi1>
    %107 = vector.broadcast %106 : vector<1x8xi1> to vector<8x8xi1>
    %108 = vector.broadcast %cst_44 : f32 to vector<8x8xf32>
    %109 = arith.select %107, %108, %105 : vector<8x8xi1>, vector<8x8xf32>
    %cst_45 = arith.constant dense<0xFF800000> : vector<8xf32>
    %110 = vector.multi_reduction <maximumf>, %109, %cst_45 [1] : vector<8x8xf32> to vector<8xf32>
    %111 = vector.shape_cast %110 : vector<8xf32> to vector<8x1xf32>
    %112 = vector.broadcast %111 : vector<8x1xf32> to vector<8x8xf32>
    %113 = arith.subf %109, %112 : vector<8x8xf32>
    %114 = math.exp %113 : vector<8x8xf32>
    %cst_46 = arith.constant dense<0.000000e+00> : vector<8xf32>
    %115 = vector.multi_reduction <add>, %114, %cst_46 [1] : vector<8x8xf32> to vector<8xf32>
    %116 = vector.shape_cast %115 : vector<8xf32> to vector<8x1xf32>
    %117 = tpu.reciprocal %116 {approx = true} : vector<8x1xf32> -> vector<8x1xf32>
    %118 = vector.broadcast %117 : vector<8x1xf32> to vector<8x8xf32>
    %119 = arith.mulf %114, %118 : vector<8x8xf32>
    %120 = vector.extract_strided_slice %39 {offsets = [0, 24], sizes = [8, 8], strides = [1, 1]} : vector<8x32xf32> to vector<8x8xf32>
    %cst_47 = arith.constant dense<0.000000e+00> : vector<8x8xf32>
    %121 = tpu.matmul %119, %120, %cst_47 {dimension_numbers = #tpu.dot_dimension_numbers<[1], [0], [0], [1], [0, 0, 1, 1], [], []>} : vector<8x8xf32>, vector<8x8xf32>, vector<8x8xf32> -> vector<8x8xf32>
    %122 = tpu.concatenate %64, %83, %102, %121 in 1 : vector<8x8xf32>, vector<8x8xf32>, vector<8x8xf32>, vector<8x8xf32> -> vector<8x32xf32>
    %c0_48 = arith.constant 0 : index
    %c0_49 = arith.constant 0 : index
    %123 = vector.load %arg10[%c0_48, %c0_49] : memref<32x32xf32, #tpu.memory_space<vmem>>, vector<32x32xf32>
    %cst_50 = arith.constant dense<0.000000e+00> : vector<8x32xf32>
    %124 = tpu.matmul %122, %123, %cst_50 {dimension_numbers = #tpu.dot_dimension_numbers<[1], [0], [0], [1], [0, 0, 1, 1], [], []>} : vector<8x32xf32>, vector<32x32xf32>, vector<8x32xf32> -> vector<8x32xf32>
    %c0_51 = arith.constant 0 : index
    %c0_52 = arith.constant 0 : index
    %125 = vector.load %arg11[%c0_51, %c0_52] : memref<1x32xf32, #tpu.memory_space<vmem>>, vector<1x32xf32>
    %126 = vector.broadcast %125 : vector<1x32xf32> to vector<8x32xf32>
    %127 = arith.addf %124, %126 : vector<8x32xf32>
    %128 = arith.addf %1, %127 : vector<8x32xf32>
    %c0_53 = arith.constant 0 : index
    %c0_54 = arith.constant 0 : index
    %c0_55 = arith.constant 0 : index
    %129 = vector.load %arg12[%c0_53, %c0_54, %c0_55] : memref<1x8x32xf32, #tpu.memory_space<vmem>>, vector<1x8x32xf32>
    %130 = vector.shape_cast %129 : vector<1x8x32xf32> to vector<8x32xf32>
    %131 = vector.shape_cast %128 : vector<8x32xf32> to vector<1x8x32xf32>
    tpu.vector_store %arg12[%c0_53, %c0_54, %c0_55], %131 {strides = array<i32>} : memref<1x8x32xf32, #tpu.memory_space<vmem>>, vector<1x8x32xf32>,
    return
  }
  func.func @transform_0(%arg0: i32) -> (i32, i32, i32) {
    %c0_i32 = arith.constant 0 : i32
    %c0_i32_0 = arith.constant 0 : i32
    %c0_i32_1 = arith.constant 0 : i32
    return %arg0, %c0_i32, %c0_i32_0 : i32, i32, i32
  }
  func.func @transform_1(%arg0: i32) -> (i32, i32, i32) {
    %c0_i32 = arith.constant 0 : i32
    %c0_i32_0 = arith.constant 0 : i32
    %c0_i32_1 = arith.constant 0 : i32
    return %arg0, %c0_i32, %c0_i32_0 : i32, i32, i32
  }
  func.func @transform_2(%arg0: i32) -> (i32, i32, i32) {
    %c0_i32 = arith.constant 0 : i32
    %c0_i32_0 = arith.constant 0 : i32
    %c0_i32_1 = arith.constant 0 : i32
    return %arg0, %c0_i32, %c0_i32_0 : i32, i32, i32
  }
  func.func @transform_3(%arg0: i32) -> (i32, i32) {
    %c0_i32 = arith.constant 0 : i32
    %c0_i32_0 = arith.constant 0 : i32
    %c0_i32_1 = arith.constant 0 : i32
    return %c0_i32, %c0_i32_0 : i32, i32
  }
  func.func @transform_4(%arg0: i32) -> (i32, i32) {
    %c0_i32 = arith.constant 0 : i32
    %c0_i32_0 = arith.constant 0 : i32
    %c0_i32_1 = arith.constant 0 : i32
    return %c0_i32, %c0_i32_0 : i32, i32
  }
  func.func @transform_5(%arg0: i32) -> (i32, i32) {
    %c0_i32 = arith.constant 0 : i32
    %c0_i32_0 = arith.constant 0 : i32
    %c0_i32_1 = arith.constant 0 : i32
    return %c0_i32, %c0_i32_0 : i32, i32
  }
  func.func @transform_6(%arg0: i32) -> (i32, i32) {
    %c0_i32 = arith.constant 0 : i32
    %c0_i32_0 = arith.constant 0 : i32
    %c0_i32_1 = arith.constant 0 : i32
    return %c0_i32, %c0_i32_0 : i32, i32
  }
  func.func @transform_7(%arg0: i32) -> (i32, i32) {
    %c0_i32 = arith.constant 0 : i32
    %c0_i32_0 = arith.constant 0 : i32
    %c0_i32_1 = arith.constant 0 : i32
    return %c0_i32, %c0_i32_0 : i32, i32
  }
  func.func @transform_8(%arg0: i32) -> (i32, i32) {
    %c0_i32 = arith.constant 0 : i32
    %c0_i32_0 = arith.constant 0 : i32
    %c0_i32_1 = arith.constant 0 : i32
    return %c0_i32, %c0_i32_0 : i32, i32
  }
  func.func @transform_9(%arg0: i32) -> (i32, i32) {
    %c0_i32 = arith.constant 0 : i32
    %c0_i32_0 = arith.constant 0 : i32
    %c0_i32_1 = arith.constant 0 : i32
    return %c0_i32, %c0_i32_0 : i32, i32
  }
  func.func @transform_10(%arg0: i32) -> (i32, i32) {
    %c0_i32 = arith.constant 0 : i32
    %c0_i32_0 = arith.constant 0 : i32
    %c0_i32_1 = arith.constant 0 : i32
    return %c0_i32, %c0_i32_0 : i32, i32
  }
  func.func @transform_11(%arg0: i32) -> (i32, i32, i32) {
    %c0_i32 = arith.constant 0 : i32
    %c0_i32_0 = arith.constant 0 : i32
    %c0_i32_1 = arith.constant 0 : i32
    return %arg0, %c0_i32, %c0_i32_0 : i32, i32, i32
  }
}

module attributes {stable_mosaic.version = 11 : i64} {
  func.func @_ffn_sublayer_kernel(%arg0: i32, %arg1: memref<8x32xf32, #tpu.memory_space<vmem>>, %arg2: memref<1x32xf32, #tpu.memory_space<vmem>>, %arg3: memref<1x32xf32, #tpu.memory_space<vmem>>, %arg4: memref<32x64xf32, #tpu.memory_space<vmem>>, %arg5: memref<1x64xf32, #tpu.memory_space<vmem>>, %arg6: memref<64x32xf32, #tpu.memory_space<vmem>>, %arg7: memref<1x32xf32, #tpu.memory_space<vmem>>, %arg8: memref<8x32xf32, #tpu.memory_space<vmem>>) attributes {dimension_semantics = [#tpu.dimension_semantics<parallel>], iteration_bounds = array<i64: 2>, scalar_prefetch = 0 : i64, scratch_operands = 0 : i64, tpu.core_type = #tpu.core_type<tc>, window_params = [{transform_indices = @transform_0, window_bounds = array<i64: 8, 32>}, {pipeline_mode = #tpu.pipeline_mode<synchronous>, transform_indices = @transform_1, window_bounds = array<i64: 1, 32>}, {pipeline_mode = #tpu.pipeline_mode<synchronous>, transform_indices = @transform_2, window_bounds = array<i64: 1, 32>}, {pipeline_mode = #tpu.pipeline_mode<synchronous>, transform_indices = @transform_3, window_bounds = array<i64: 32, 64>}, {pipeline_mode = #tpu.pipeline_mode<synchronous>, transform_indices = @transform_4, window_bounds = array<i64: 1, 64>}, {pipeline_mode = #tpu.pipeline_mode<synchronous>, transform_indices = @transform_5, window_bounds = array<i64: 64, 32>}, {pipeline_mode = #tpu.pipeline_mode<synchronous>, transform_indices = @transform_6, window_bounds = array<i64: 1, 32>}, {transform_indices = @transform_7, window_bounds = array<i64: 8, 32>}]} {
    %c0 = arith.constant 0 : index
    %c0_0 = arith.constant 0 : index
    %0 = vector.load %arg1[%c0, %c0_0] : memref<8x32xf32, #tpu.memory_space<vmem>>, vector<8x32xf32>
    %c0_1 = arith.constant 0 : index
    %c0_2 = arith.constant 0 : index
    %1 = vector.load %arg2[%c0_1, %c0_2] : memref<1x32xf32, #tpu.memory_space<vmem>>, vector<1x32xf32>
    %c0_3 = arith.constant 0 : index
    %c0_4 = arith.constant 0 : index
    %2 = vector.load %arg3[%c0_3, %c0_4] : memref<1x32xf32, #tpu.memory_space<vmem>>, vector<1x32xf32>
    %cst = arith.constant dense<0.000000e+00> : vector<8xf32>
    %3 = vector.multi_reduction <add>, %0, %cst [1] : vector<8x32xf32> to vector<8xf32>
    %4 = vector.shape_cast %3 : vector<8xf32> to vector<8x1xf32>
    %cst_5 = arith.constant 3.200000e+01 : f32
    %5 = vector.broadcast %cst_5 : f32 to vector<8x1xf32>
    %6 = arith.divf %4, %5 : vector<8x1xf32>
    %7 = vector.broadcast %6 : vector<8x1xf32> to vector<8x32xf32>
    %8 = arith.subf %0, %7 : vector<8x32xf32>
    %9 = arith.mulf %8, %8 : vector<8x32xf32>
    %cst_6 = arith.constant dense<0.000000e+00> : vector<8xf32>
    %10 = vector.multi_reduction <add>, %9, %cst_6 [1] : vector<8x32xf32> to vector<8xf32>
    %11 = vector.shape_cast %10 : vector<8xf32> to vector<8x1xf32>
    %cst_7 = arith.constant 0.0322580636 : f32
    %12 = vector.broadcast %cst_7 : f32 to vector<8x1xf32>
    %13 = arith.mulf %11, %12 : vector<8x1xf32>
    %14 = math.sqrt %13 : vector<8x1xf32>
    %15 = vector.broadcast %6 : vector<8x1xf32> to vector<8x32xf32>
    %16 = arith.subf %0, %15 : vector<8x32xf32>
    %17 = vector.broadcast %1 : vector<1x32xf32> to vector<8x32xf32>
    %18 = arith.mulf %17, %16 : vector<8x32xf32>
    %cst_8 = arith.constant 9.99999997E-7 : f32
    %19 = vector.broadcast %cst_8 : f32 to vector<8x1xf32>
    %20 = arith.addf %14, %19 : vector<8x1xf32>
    %21 = vector.broadcast %20 : vector<8x1xf32> to vector<8x32xf32>
    %22 = arith.divf %18, %21 : vector<8x32xf32>
    %23 = vector.broadcast %2 : vector<1x32xf32> to vector<8x32xf32>
    %24 = arith.addf %22, %23 : vector<8x32xf32>
    %c0_9 = arith.constant 0 : index
    %c0_10 = arith.constant 0 : index
    %25 = vector.load %arg4[%c0_9, %c0_10] : memref<32x64xf32, #tpu.memory_space<vmem>>, vector<32x64xf32>
    %cst_11 = arith.constant dense<0.000000e+00> : vector<8x64xf32>
    %26 = tpu.matmul %24, %25, %cst_11 {dimension_numbers = #tpu.dot_dimension_numbers<[1], [0], [0], [1], [0, 0, 1, 1], [], []>} : vector<8x32xf32>, vector<32x64xf32>, vector<8x64xf32> -> vector<8x64xf32>
    %c0_12 = arith.constant 0 : index
    %c0_13 = arith.constant 0 : index
    %27 = vector.load %arg5[%c0_12, %c0_13] : memref<1x64xf32, #tpu.memory_space<vmem>>, vector<1x64xf32>
    %28 = vector.broadcast %27 : vector<1x64xf32> to vector<8x64xf32>
    %29 = arith.addf %26, %28 : vector<8x64xf32>
    %cst_14 = arith.constant 0.000000e+00 : f32
    %30 = vector.broadcast %cst_14 : f32 to vector<8x64xf32>
    %31 = arith.maximumf %29, %30 : vector<8x64xf32>
    %c0_15 = arith.constant 0 : index
    %c0_16 = arith.constant 0 : index
    %32 = vector.load %arg6[%c0_15, %c0_16] : memref<64x32xf32, #tpu.memory_space<vmem>>, vector<64x32xf32>
    %cst_17 = arith.constant dense<0.000000e+00> : vector<8x32xf32>
    %33 = tpu.matmul %31, %32, %cst_17 {dimension_numbers = #tpu.dot_dimension_numbers<[1], [0], [0], [1], [0, 0, 1, 1], [], []>} : vector<8x64xf32>, vector<64x32xf32>, vector<8x32xf32> -> vector<8x32xf32>
    %c0_18 = arith.constant 0 : index
    %c0_19 = arith.constant 0 : index
    %34 = vector.load %arg7[%c0_18, %c0_19] : memref<1x32xf32, #tpu.memory_space<vmem>>, vector<1x32xf32>
    %35 = vector.broadcast %34 : vector<1x32xf32> to vector<8x32xf32>
    %36 = arith.addf %33, %35 : vector<8x32xf32>
    %37 = arith.addf %0, %36 : vector<8x32xf32>
    %c0_20 = arith.constant 0 : index
    %c0_21 = arith.constant 0 : index
    %38 = vector.load %arg8[%c0_20, %c0_21] : memref<8x32xf32, #tpu.memory_space<vmem>>, vector<8x32xf32>
    tpu.vector_store %arg8[%c0_20, %c0_21], %37 {strides = array<i32>} : memref<8x32xf32, #tpu.memory_space<vmem>>, vector<8x32xf32>,
    return
  }
  func.func @transform_0(%arg0: i32) -> (i32, i32) {
    %c0_i32 = arith.constant 0 : i32
    %c0_i32_0 = arith.constant 0 : i32
    return %arg0, %c0_i32 : i32, i32
  }
  func.func @transform_1(%arg0: i32) -> (i32, i32) {
    %c0_i32 = arith.constant 0 : i32
    %c0_i32_0 = arith.constant 0 : i32
    %c0_i32_1 = arith.constant 0 : i32
    return %c0_i32, %c0_i32_0 : i32, i32
  }
  func.func @transform_2(%arg0: i32) -> (i32, i32) {
    %c0_i32 = arith.constant 0 : i32
    %c0_i32_0 = arith.constant 0 : i32
    %c0_i32_1 = arith.constant 0 : i32
    return %c0_i32, %c0_i32_0 : i32, i32
  }
  func.func @transform_3(%arg0: i32) -> (i32, i32) {
    %c0_i32 = arith.constant 0 : i32
    %c0_i32_0 = arith.constant 0 : i32
    %c0_i32_1 = arith.constant 0 : i32
    return %c0_i32, %c0_i32_0 : i32, i32
  }
  func.func @transform_4(%arg0: i32) -> (i32, i32) {
    %c0_i32 = arith.constant 0 : i32
    %c0_i32_0 = arith.constant 0 : i32
    %c0_i32_1 = arith.constant 0 : i32
    return %c0_i32, %c0_i32_0 : i32, i32
  }
  func.func @transform_5(%arg0: i32) -> (i32, i32) {
    %c0_i32 = arith.constant 0 : i32
    %c0_i32_0 = arith.constant 0 : i32
    %c0_i32_1 = arith.constant 0 : i32
    return %c0_i32, %c0_i32_0 : i32, i32
  }
  func.func @transform_6(%arg0: i32) -> (i32, i32) {
    %c0_i32 = arith.constant 0 : i32
    %c0_i32_0 = arith.constant 0 : i32
    %c0_i32_1 = arith.constant 0 : i32
    return %c0_i32, %c0_i32_0 : i32, i32
  }
  func.func @transform_7(%arg0: i32) -> (i32, i32) {
    %c0_i32 = arith.constant 0 : i32
    %c0_i32_0 = arith.constant 0 : i32
    return %arg0, %c0_i32 : i32, i32
  }
}

</mosaic_0001>

<bundles_post_ra>
// kernel: decoder_layer_forward.3
= control target key start
LH: loop header
LB: loop body
LE: loop exit
PB: predicated region body
PF: predicated region fallthrough
CT: control target
= control target key end

     0   :  { %s1506_s27 = smov 0   ;;  %s1652_s0 = inlined_call_operand.vmem [shape: f32[2,8,32], index: 0, kind: input, shape index: {}]   ;;  %s1653_s1 = inlined_call_operand.vmem [shape: f32[2,8,8], index: 1, kind: input, shape index: {}]   ;;  %s1654_s2 = inlined_call_operand.vmem [shape: f32[1,32], index: 2, kind: input, shape index: {}]   ;;  %s1655_s3 = inlined_call_operand.vmem [shape: f32[1,32], index: 3, kind: input, shape index: {}]   ;;  %s1656_s4 = inlined_call_operand.vmem [shape: f32[32,96], index: 4, kind: input, shape index: {}]   ;;  %s1657_s5 = inlined_call_operand.vmem [shape: f32[1,96], index: 5, kind: input, shape index: {}]   ;;  %s1658_s6 = inlined_call_operand.vmem [shape: f32[32,32], index: 6, kind: input, shape index: {}]   ;;  %s1659_s7 = inlined_call_operand.vmem [shape: f32[1,32], index: 7, kind: input, shape index: {}]   ;;  %s1660_s8 = inlined_call_operand.vmem [shape: f32[2,8,32], index: 8, kind: output, shape index: {}]  }
   0x1 LB: > { %s1277_s28 = sadd.s32 4294967295, %s1443_s27   ;;  %p1281_p0 = scmp.ge.s32.totalorder %s1443_s27, 1  ;;  %s1443_s27 = sphi %s1506_s27, %s18_s27  }
   0x2   : > { %p270_p1 = scmp.lt.s32.totalorder %s1443_s27, 3 }
   0x4   : > { %p271_p2 = pnand %p1281_p0, %p270_p1 }
   0x5   : > { %p306_p3 = scmp.lt.s32.totalorder (!%p271_p2), %s1277_s28, 1  ;;  %s1447_s25 = smov (!%p271_p2), 64  }
   0x6   : > { %274 = sbr.rel (%p271_p2) target bundleno = 2183 (0x887), region = 52  ;;  %s1448_s26 = smov (!%p271_p2), 96  }
   0x7   : > { %s1450_s11 = smov (!%p271_p2), 80   ;;  %s1451_s12 = smov (!%p271_p2), 120  }
   0x8   : > { %s1452_s13 = smov (!%p271_p2), 112   ;;  %s1453_s14 = smov (!%p271_p2), 72  }
   0x9   : > { %s1454_s15 = smov (!%p271_p2), 104   ;;  %s1455_s16 = smov (!%p271_p2), 48  }
   0xa   : > { %s1456_s17 = smov (!%p271_p2), 56   ;;  %s1457_s18 = smov (!%p271_p2), 40  }
   0xb   : > { %s1662_s28 = smov (!%p306_p3, %s1277_s28), 1  ;;  %vm321_vm0 = vcmask 261120   ;;  %v360_v7 = vld [vmem:[%s1656_s4 + $0x18] sm:$0xff]  ;;  %v1445_v8 = vmov 0.0   ;;  %v359_v9 = vld [vmem:[%s1656_s4 + $0x10] sm:$0xff]  ;;  %vm1446_vm1 = vmmov 0  }
   0xc   : > { %s1514_s29 = sshll.u32 %s1662_s28, 3  ;;  %1331 = vmatprep.subr.mxu0 %v1445_v8  ;;  %1339 = vmatprep.mubr.msk.f32.mxu0 %vm1446_vm1, %v1445_v8  ;;  %v358_v10 = vld [vmem:[%s1656_s4 + $0x8] sm:$0xff]  ;;  %v357_v11 = vld [vmem:[%s1656_s4] sm:$0xff]  ;;  %s1449_s28 = smov 88   ;;  %vm447_vm4 = vcmask 64512   ;;  %vm1122_vm6 = vcmask 130048  }
   0xd   : > { %s309_s10 = scalar_lea.vmem %s1652_s0, %s1514_s29  ;;  %1332 = vmatpush3.msra.mxu0 %v360_v7  ;;  %1342 = vmatprep.subr.mxu1 %v1445_v8  ;;  %v1285_v20 = vld [vmem:[%s1654_s2] ss:$0 sm:$0xff]  ;;  %s1459_s30 = smov 16   ;;  %vm1124_vm7 = vcmask 195584  }
   0xe   : > { %v1520_v0 = vld [vmem:[%s309_s10] sm:$0xff]  ;;  %1333 = vmatprep.subr.mxu0 %v1445_v8  ;;  %1344 = vmatprep.mubr.msk.f32.mxu1 %vm1446_vm1, %v1445_v8  ;;  %s313_s10 = scalar_lea.vmem %s1653_s1, %s1514_s29  ;;  %s1460_s9 = smov 24  }
   0xf   : > { %v322_v1 = vsel %vm321_vm0, %v1520_v0, 0.0  ;;  %1334 = vmatpush3.msra.mxu0 %v359_v9  ;;  %v1286_v23 = vld [vmem:[%s1655_s3] ss:$0 sm:$0xff] }
  0x10   : > { %323 = vadd.xlane.f32.xlu0 %v322_v1  ;;  %1335 = vmatprep.subr.mxu0 %v1445_v8  ;;  %v1287_v26 = vld [vmem:[%s1657_s5] ss:$0 sm:$0xff] }
  0x11   : > { %1336 = vmatpush3.msra.mxu0 %v358_v10  ;;  %v441_v33 = vld [vmem:[%s313_s10] sm:$0xff] }
  0x12   : > { %1337 = vmatprep.subr.mxu0 %v1445_v8  ;;  %vm443_vm5 = vcmp.eq.f32.partialorder %v441_v33, 0.0  ;;  %v1127_v33 = vld [vmem:[%s1658_s6 + $0x8] sm:$0xff] }
  0x13   : > { %1338 = vmatpush3.msra.mxu0 %v357_v11 }
  0x14   : > { %1362 = vmatprep.subr.mxu0 %v1445_v8 }
  0x99   : > { %v324_v2 = vpop.xlane.xlu0 %323 }
  0x9a   : > { %v326_v3 = vmul.f32 0.03125, %v324_v2 }
  0x9c   : > { %v327_v4 = vsub.f32 %v1520_v0, %v326_v3 }
  0x9e   : > { %v328_v5 = vmul.f32 %v327_v4, %v327_v4  ;;  %v346_v21 = vmul.f32 %v1285_v20, %v327_v4 }
  0xa0   : > { %v329_v6 = vsel %vm321_vm0, %v328_v5, 0.0 }
  0xa1   : > { %330 = vadd.xlane.f32.xlu0 %v329_v6 }
 0x12a   : > { %v331_v12 = vpop.xlane.xlu0 %330 }
 0x12b   : > { %v332_v13 = vmul.f32 0.032258064, %v331_v12 }
 0x12d   : > { %1417 = vrsqrt.f32 %v332_v13  ;;  %vm335_vm2 = vcmp.eq.f32.partialorder %v332_v13, inf  ;;  %v338_v16 = vand.u32 2147483648, %v332_v13  ;;  %vm337_vm3 = vcmp.eq.f32.partialorder %v332_v13, 0.0 }
 0x13a   : > { %v1418_v14 = vpop.eup %1417 }
 0x13b   : > { %v334_v15 = vmul.f32 %v1418_v14, %v332_v13 }
 0x13d   : > { %v336_v17 = vsel %vm335_vm2, %v332_v13, %v334_v15 }
 0x13e   : > { %v339_v18 = vsel %vm337_vm3, %v338_v16, %v336_v17 }
 0x13f   : > { %v347_v19 = vadd.f32 1e-06, %v339_v18 }
 0x141   : > { %1419 = vrcp.f32 %v347_v19 }
 0x14e   : > { %v1420_v22 = vpop.eup %1419 }
 0x14f   : > { %v349_v24 = vmul.f32 %v1420_v22, %v346_v21 }
 0x151   : > { %v356_v25 = vadd.f32 %v1286_v23, %v349_v24 }
 0x153   : > { %1340 = vmatmul.mubr.msk.f32.vlgmr.msra.gmra.mxu0 %vm321_vm0, %v356_v25 }
 0x154   : > { %1364 = vmatprep.mubr.msk.f32.mxu0 %vm1446_vm1, %v1445_v8 }
 0x213   : > { %v437_v27 = vpop.f32.mrf.mxu0 }
 0x214   : > { %v1560_v28 = vadd.f32 %v1287_v26, %v437_v27 }
 0x215   : > { %v1341_v29 = vpop.f32.mrf.mxu0 }
 0x216   : > { %535 = vrot.lane.b32.xlu0 %v1560_v28, %s1447_s25  ;;  %445 = vrot.lane.b32.xlu1 %v1560_v28, %s1448_s26  ;;  %v442_v31 = vmul.f32 0.35355338, %v1560_v28 }
 0x21a   : > { %613 = vrot.lane.b32.xlu0 %v1560_v28, %s1449_s28  ;;  %s1458_s28 = smov 8  }
 0x288   : > { %v446_v30 = vpop.permute.xlu1 %445  ;;  %v536_v32 = vpop.permute.xlu0 %535 }
 0x289   : > { %1343 = vmatpush3.xpose.msk.msra.mxu1 %vm447_vm4, %v446_v30 }
 0x28a   : > { %1347 = vmatprep.subr.mxu1 %v1445_v8 }
 0x28c   : > { %1345 = vmatmul.mubr.msk.f32.vlgmr.msra.gmra.mxu1 %vm447_vm4, %v442_v31  ;;  %v614_v44 = vpop.permute.xlu0 %613 }
 0x28d   : > { %1348 = vmatpush3.msra.mxu1 %v536_v32  ;;  %1349 = vmatprep.mubr.msk.f32.mxu1 %vm1446_vm1, %v1445_v8  ;;  %v1128_v32 = vld [vmem:[%s1658_s6 + $0x10] sm:$0xff] }
 0x28e   : > { %1352 = vmatprep.subr.mxu1 %v1445_v8 }
 0x34c   : > { %v519_v34 = vpop.f32.mrf.mxu1 }
 0x34d   : > { %v523_v35 = vsel %vm443_vm5, -1e+09, %v519_v34  ;;  %v1126_v34 = vld [vmem:[%s1658_s6] sm:$0xff] }
 0x34e   : > { %v1346_v36 = vpop.f32.mrf.mxu1  ;;  %v524_v37 = vsel %vm447_vm4, %v523_v35, -inf }
 0x34f   : > { %525 = vmax.xlane.f32.xlu1 %v524_v37 }
 0x360   : > { %779 = vrot.lane.b32.xlu1 %v1560_v28, %s1450_s11 }
 0x3d8   : > { %v526_v38 = vpop.xlane.xlu1 %525 }
 0x3d9   : > { %v527_v39 = vsub.f32 %v523_v35, %v526_v38 }
 0x3db   : > { %v528_v40 = vmul.f32 1.442695, %v527_v39 }
 0x3dc   : > { %v780_v41 = vpop.permute.xlu1 %779 }
 0x3dd   : > { %1421 = vpow2.f32 %v528_v40  ;;  %1363 = vmatpush3.xpose.msk.msra.mxu0 %vm447_vm4, %v780_v41 }
 0x3de   : > { %1372 = vmatprep.subr.mxu0 %v1445_v8 }
 0x3ea   : > { %v1422_v42 = vpop.eup %1421 }
 0x3eb   : > { %v530_v43 = vsel %vm447_vm4, %v1422_v42, 0.0 }
 0x3ec   : > { %531 = vadd.xlane.f32.xlu0 %v530_v43 }
 0x402   : > { %611 = vrot.lane.b32.xlu0 %v442_v31, %s1451_s12 }
 0x406   : > { %777 = vrot.lane.b32.xlu0 %v442_v31, %s1452_s13 }
 0x40a   : > { %945 = vrot.lane.b32.xlu0 %v1560_v28, %s1453_s14  ;;  %s317_s14 = scalar_lea.vmem %s1660_s8, %s1514_s29 }
 0x40e   : > { %943 = vrot.lane.b32.xlu0 %v442_v31, %s1454_s15  ;;  %v1129_v31 = vld [vmem:[%s1658_s6 + $0x18] sm:$0xff] }
 0x475   : > { %v532_v45 = vpop.xlane.xlu0 %531 }
 0x476   : > { %1423 = vrcp.f32 %v532_v45 }
 0x479   : > { %v612_v46 = vpop.permute.xlu0 %611 }
 0x47d   : > { %v778_v47 = vpop.permute.xlu0 %777 }
 0x47e   : > { %1365 = vmatmul.mubr.msk.f32.vlgmr.msra.gmra.mxu0 %vm447_vm4, %v778_v47 }
 0x47f   : > { %1374 = vmatprep.mubr.msk.f32.mxu0 %vm1446_vm1, %v1445_v8 }
 0x481   : > { %v946_v48 = vpop.permute.xlu0 %945 }
 0x482   : > { %1373 = vmatpush3.xpose.msk.msra.mxu0 %vm447_vm4, %v946_v48 }
 0x483   : > { %v1424_v49 = vpop.eup %1423  ;;  %1382 = vmatprep.subr.mxu0 %v1445_v8 }
 0x484   : > { %v534_v50 = vmul.f32 %v1424_v49, %v1422_v42 }
 0x485   : > { %v944_v51 = vpop.permute.xlu0 %943 }
 0x486   : > { %1350 = vmatmul.mubr.msk.f32.vlgmr.msra.gmra.mxu1 %vm447_vm4, %v534_v50  ;;  %1375 = vmatmul.mubr.msk.f32.vlgmr.msra.gmra.mxu0 %vm447_vm4, %v944_v51 }
 0x487   : > { %1353 = vmatpush3.xpose.msk.msra.mxu1 %vm447_vm4, %v614_v44  ;;  %1354 = vmatprep.mubr.msk.f32.mxu1 %vm1446_vm1, %v1445_v8 }
 0x488   : > { %1357 = vmatprep.subr.mxu1 %v1445_v8  ;;  %1390 = vmatprep.mubr.msk.f32.mxu0 %vm1446_vm1, %v1445_v8 }
 0x489   : > { %1383 = vmatpush3.msra.mxu0 %v1129_v31 }
 0x48a   : > { %1355 = vmatmul.mubr.msk.f32.vlgmr.msra.gmra.mxu1 %vm447_vm4, %v612_v46  ;;  %1384 = vmatprep.subr.mxu0 %v1445_v8  ;;  %v1301_v46 = vld [vmem:[%s1659_s7] ss:$0 sm:$0xff] }
 0x48b   : > { %1359 = vmatprep.mubr.msk.f32.mxu1 %vm1446_vm1, %v1445_v8  ;;  %1385 = vmatpush3.msra.mxu0 %v1128_v32 }
 0x48c   : > { %1386 = vmatprep.subr.mxu0 %v1445_v8 }
 0x48d   : > { %1387 = vmatpush3.msra.mxu0 %v1127_v33 }
 0x48e   : > { %1388 = vmatprep.subr.mxu0 %v1445_v8 }
 0x48f   : > { %1389 = vmatpush3.msra.mxu0 %v1126_v34 }
 0x53e   : > { %v851_v52 = vpop.f32.mrf.mxu0 }
 0x53f   : > { %v855_v53 = vsel %vm443_vm5, -1e+09, %v851_v52 }
 0x540   : > { %v1366_v54 = vpop.f32.mrf.mxu0  ;;  %v856_v55 = vsel %vm447_vm4, %v855_v53, -inf }
 0x541   : > { %857 = vmax.xlane.f32.xlu1 %v856_v55 }
 0x546   : > { %v1601_v56 = vpop.f32.mrf.mxu1  ;;  %v1017_v57 = vpop.f32.mrf.mxu0 }
 0x547   : > { %v1021_v1 = vsel %vm443_vm5, -1e+09, %v1017_v57 }
 0x548   : > { %v1351_v58 = vpop.f32.mrf.mxu1  ;;  %v1376_v59 = vpop.f32.mrf.mxu0  ;;  %v1022_v2 = vsel %vm447_vm4, %v1021_v1, -inf }
 0x54a   : > { %v685_v60 = vpop.f32.mrf.mxu1 }
 0x54b   : > { %v689_v61 = vsel %vm443_vm5, -1e+09, %v685_v60 }
 0x54c   : > { %v1356_v62 = vpop.f32.mrf.mxu1  ;;  %v690_v63 = vsel %vm447_vm4, %v689_v61, -inf }
 0x54d   : > { %691 = vmax.xlane.f32.xlu0 %v690_v63 }
 0x551   : > { %1023 = vmax.xlane.f32.xlu0 %v1022_v2 }
 0x5ca   : > { %v858_v3 = vpop.xlane.xlu1 %857 }
 0x5cb   : > { %v859_v4 = vsub.f32 %v855_v53, %v858_v3 }
 0x5cd   : > { %v860_v5 = vmul.f32 1.442695, %v859_v4 }
 0x5cf   : > { %1425 = vpow2.f32 %v860_v5 }
 0x5d6   : > { %v692_v6 = vpop.xlane.xlu0 %691 }
 0x5d7   : > { %v693_v7 = vsub.f32 %v689_v61, %v692_v6 }
 0x5d9   : > { %v694_v9 = vmul.f32 1.442695, %v693_v7 }
 0x5da   : > { %v1024_v10 = vpop.xlane.xlu0 %1023 }
 0x5db   : > { %1427 = vpow2.f32 %v694_v9  ;;  %v1025_v11 = vsub.f32 %v1021_v1, %v1024_v10 }
 0x5dc   : > { %v1426_v12 = vpop.eup %1425 }
 0x5dd   : > { %v1026_v13 = vmul.f32 1.442695, %v1025_v11  ;;  %v862_v14 = vsel %vm447_vm4, %v1426_v12, 0.0 }
 0x5de   : > { %863 = vadd.xlane.f32.xlu0 %v862_v14 }
 0x5df   : > { %1429 = vpow2.f32 %v1026_v13 }
 0x5e8   : > { %v1428_v15 = vpop.eup %1427 }
 0x5e9   : > { %v696_v16 = vsel %vm447_vm4, %v1428_v15, 0.0 }
 0x5ea   : > { %697 = vadd.xlane.f32.xlu0 %v696_v16 }
 0x5ec   : > { %v1430_v17 = vpop.eup %1429 }
 0x5ed   : > { %v1028_v18 = vsel %vm447_vm4, %v1430_v17, 0.0 }
 0x5ee   : > { %1029 = vadd.xlane.f32.xlu1 %v1028_v18 }
 0x5ff   : > { %867 = vrot.lane.b32.xlu1 %v1560_v28, %s1455_s16 }
 0x600   : > { %701 = vrot.lane.b32.xlu0 %v1560_v28, %s1456_s17 }
 0x603   : > { %1033 = vrot.lane.b32.xlu1 %v1560_v28, %s1457_s18 }
 0x667   : > { %v864_v19 = vpop.xlane.xlu0 %863 }
 0x673   : > { %v698_v20 = vpop.xlane.xlu0 %697 }
 0x674   : > { %1431 = vrcp.f32 %v698_v20 }
 0x675   : > { %1433 = vrcp.f32 %v864_v19 }
 0x677   : > { %v1030_v21 = vpop.xlane.xlu1 %1029  ;;  %v702_v22 = vpop.permute.xlu0 %701 }
 0x678   : > { %1358 = vmatpush3.msra.mxu1 %v702_v22  ;;  %1435 = vrcp.f32 %v1030_v21 }
 0x679   : > { %1367 = vmatprep.subr.mxu1 %v1445_v8 }
 0x67b   : > { %v868_v24 = vpop.permute.xlu1 %867 }
 0x67f   : > { %v1034_v29 = vpop.permute.xlu1 %1033 }
 0x681   : > { %v1432_v23 = vpop.eup %1431 }
 0x682   : > { %v700_v25 = vmul.f32 %v1432_v23, %v1428_v15  ;;  %v1434_v26 = vpop.eup %1433 }
 0x683   : > { %v866_v27 = vmul.f32 %v1434_v26, %v1426_v12 }
 0x684   : > { %1360 = vmatmul.mubr.msk.f32.vlgmr.msra.gmra.mxu1 %vm447_vm4, %v700_v25 }
 0x685   : > { %1368 = vmatpush3.msra.mxu1 %v868_v24  ;;  %1369 = vmatprep.mubr.msk.f32.mxu1 %vm1446_vm1, %v1445_v8  ;;  %v1436_v28 = vpop.eup %1435 }
 0x686   : > { %1377 = vmatprep.subr.mxu1 %v1445_v8  ;;  %v1032_v30 = vmul.f32 %v1436_v28, %v1430_v17 }
 0x688   : > { %1370 = vmatmul.mubr.msk.f32.vlgmr.msra.gmra.mxu1 %vm447_vm4, %v866_v27 }
 0x689   : > { %1378 = vmatpush3.msra.mxu1 %v1034_v29  ;;  %1379 = vmatprep.mubr.msk.f32.mxu1 %vm1446_vm1, %v1445_v8 }
 0x68c   : > { %1380 = vmatmul.mubr.msk.f32.vlgmr.msra.gmra.mxu1 %vm447_vm4, %v1032_v30 }
 0x744   : > { %v773_v35 = vpop.f32.mrf.mxu1 }
 0x745   : > { %1110 = vrot.lane.b32.xlu1 %v773_v35, %s1458_s28 }
 0x746   : > { %v1361_v36 = vpop.f32.mrf.mxu1 }
 0x748   : > { %v939_v37 = vpop.f32.mrf.mxu1 }
 0x749   : > { %1114 = vrot.lane.b32.xlu0 %v939_v37, %s1459_s30 }
 0x74a   : > { %v1371_v38 = vpop.f32.mrf.mxu1 }
 0x74c   : > { %v1105_v39 = vpop.f32.mrf.mxu1 }
 0x74d   : > { %1118 = vrot.lane.b32.xlu1 %v1105_v39, %s1460_s9 }
 0x74e   : > { %v1381_v40 = vpop.f32.mrf.mxu1 }
 0x7b7   : > { %v1111_v41 = vpop.permute.xlu1 %1110 }
 0x7b8   : > { %v1121_v42 = vsel %vm447_vm4, %v1601_v56, %v1111_v41 }
 0x7bb   : > { %v1115_v8 = vpop.permute.xlu0 %1114 }
 0x7bc   : > { %v1123_v43 = vsel %vm1122_vm6, %v1121_v42, %v1115_v8 }
 0x7bf   : > { %v1119_v44 = vpop.permute.xlu1 %1118 }
 0x7c0   : > { %v1125_v45 = vsel %vm1124_vm7, %v1123_v43, %v1119_v44 }
 0x7c1   : > { %1391 = vmatmul.mubr.msk.f32.vlgmr.msra.gmra.mxu0 %vm321_vm0, %v1125_v45 }
 0x881   : > { %v1206_v47 = vpop.f32.mrf.mxu0 }
 0x882   : > { %v1207_v48 = vadd.f32 %v1301_v46, %v1206_v47 }
 0x883   : > { %v1392_v49 = vpop.f32.mrf.mxu0 }
 0x884   : > { %v1210_v50 = vadd.f32 %v1207_v48, %v1520_v0 }
 0x886   : > { %1211 = vst.msk [vmem:[%s317_s14] sm:$0xff] %vm321_vm0, %v1210_v50 }
 0x887 PF: > { %s18_s27 = sadd.s32 1, %s1443_s27  }
 0x888   : > { %p15_p4 = scmp.ge.s32.totalorder %s18_s27, 4  }
 0x88a   :  { %17 = sbr.rel (!%p15_p4) target bundleno = 1 (0x1), region = 85 }

// kernel: decoder_layer_forward.5
= control target key start
LH: loop header
LB: loop body
LE: loop exit
PB: predicated region body
PF: predicated region fallthrough
CT: control target
= control target key end

     0   :  { %12 = vsyncpa [#allocation3], 0  ;;  %s916_s0 = inlined_call_operand.vmem [shape: f32[16,32], index: 0, kind: input, shape index: {}]   ;;  %s917_s1 = inlined_call_operand.vmem [shape: f32[1,32], index: 1, kind: input, shape index: {}]   ;;  %s918_s2 = inlined_call_operand.vmem [shape: f32[1,32], index: 2, kind: input, shape index: {}]   ;;  %s919_s3 = inlined_call_operand.vmem [shape: f32[32,64], index: 3, kind: input, shape index: {}]   ;;  %s920_s4 = inlined_call_operand.vmem [shape: f32[1,64], index: 4, kind: input, shape index: {}]   ;;  %s921_s5 = inlined_call_operand.vmem [shape: f32[64,32], index: 5, kind: input, shape index: {}]   ;;  %s922_s6 = inlined_call_operand.vmem [shape: f32[1,32], index: 6, kind: input, shape index: {}]   ;;  %s923_s7 = inlined_call_operand.hbm [shape: f32[16,32], index: 7, kind: output, shape index: {}]  }
   0x1   :  { %14 = vsyncpa [#allocation3 + $0x1], 0  ;;  %s772_s24 = smov 0   ;;  %s774_s25 = smov 0  }
   0x2   :  { %s776_s26 = smov 0   ;;  %s778_s27 = smov 0  }
   0x3 LB: > { %s793_s28 = sadd.s32 4294967295, %s727_s27   ;;  %s562_s29 = sadd.s32 4294967294, %s727_s27   ;;  %s727_s27 = sphi %s778_s27, %s929_s27   ;;  %s723_s26 = sphi %s776_s26, %s928_s26   ;;  %s719_s25 = sphi %s774_s25, %s927_s25   ;;  %s715_s24 = sphi %s772_s24, %s926_s24  }
   0x4   : > { %s797_s30 = sadd.s32 1, %s727_s27   ;;  %s179_s8 = sadd.s32 1, %s723_s26 }
   0x5   : > { %s176_s9 = ssub.s32 %s727_s27, %s797_s30  ;;  %p189_p0 = scmp.ne.s32.totalorder %s723_s26, %s719_s25 }
   0x6   : > { %p177_p1 = scmp.eq.s32.totalorder %s176_s9, 0  ;;  %p190_p2 = scmp.eq.s32.totalorder %s793_s28, 1 }
   0x7   : > { %p195_p3 = scmp.ne.s32.totalorder %s719_s25, %s715_s24  ;;  %p196_p4 = scmp.eq.s32.totalorder %s562_s29, 1 }
   0x8   : > { %s808_s10 = scalar_select %p177_p1, %s723_s26, %s179_s8  }
   0x9   : > { %p810_p5 = por %p190_p2, %p189_p0  ;;  %p814_p6 = por %p196_p4, %p195_p3 }
   0xa   : > { %p565_p7 = scmp.ge.s32.totalorder %s727_s27, 1  ;;  %p239_p8 = scmp.lt.s32.totalorder %s727_s27, 3 }
   0xc   : > { %p240_p9 = pnand %p565_p7, %p239_p8 }
   0xd   : > { %p270_p10 = scmp.lt.s32.totalorder (!%p240_p9), %s793_s28, 1  ;;  %s267_s20 = sand.u32 (!%p240_p9), 1, %s719_s25  }
   0xe   : > { %243 = sbr.rel (%p240_p9) target bundleno = 755 (0x2f3), region = 48  ;;  %s566_s21 = sshll.u32 (!%p240_p9), %s267_s20, 3 }
   0xf   : > { %s575_s29 = sshll.u32 (!%p240_p9), %s793_s28, 7  ;;  %s269_s8 = scalar_lea.vmem (!%p240_p9), [#allocation2], %s566_s21 }
  0x10   : > { %s503_s9 = sshll.u32 (!%p240_p9), %s269_s8, 4  ;;  %s501_s15 = scalar_lea.hbm (!%p240_p9), %s923_s7, %s575_s29  ;;  %s504_s9 = int_to_ptr.vmem [resolvable:$true] %s503_s9 }
  0x11   : > { %s490_s16 = scalar_lea.sflag (!%p240_p9), [#allocation3], %s267_s20 }
  0x13   : > { %s271_s13 = scalar_select %p270_p10, %s793_s28, 1  ;;  %vm277_vm0 = vcmask 261120   ;;  %v316_v7 = vld [vmem:[%s919_s3 + $0x18] sm:$0xff]  ;;  %v729_v8 = vmov 0.0   ;;  %v315_v9 = vld [vmem:[%s919_s3 + $0x10] sm:$0xff]  ;;  %vm730_vm1 = vmmov 0  }
  0x14   : > { %592 = vmatprep.subr.mxu0 %v729_v8  ;;  %600 = vmatprep.mubr.msk.f32.mxu0 %vm730_vm1, %v729_v8  ;;  %v314_v10 = vld [vmem:[%s919_s3 + $0x8] sm:$0xff]  ;;  %v313_v11 = vld [vmem:[%s919_s3] sm:$0xff]  ;;  %v405_v12 = vld [vmem:[%s921_s5 + $0x38] sm:$0xff]  ;;  %vm413_vm4 = vcmask 523264   ;;  %s731_s28 = smov [#allocation2]  }
  0x15   : > { %s567_s14 = sshll.u32 %s271_s13, 3  ;;  %593 = vmatpush3.msra.mxu0 %v316_v7  ;;  %603 = vmatprep.subr.mxu1 %v729_v8  ;;  %v404_v13 = vld [vmem:[%s921_s5 + $0x30] sm:$0xff]  ;;  %v403_v14 = vld [vmem:[%s921_s5 + $0x28] sm:$0xff]  ;;  %v402_v15 = vld [vmem:[%s921_s5 + $0x20] sm:$0xff]  ;;  %s671_s18 = sshll.u32 %s731_s28, 4  ;;  %s672_s18 = int_to_ptr.vmem [resolvable:$false] %s671_s18 }
  0x16   : > { %s273_s17 = scalar_lea.vmem %s916_s0, %s567_s14  ;;  %594 = vmatprep.subr.mxu0 %v729_v8  ;;  %619 = vmatprep.mubr.msk.f32.mxu1 %vm730_vm1, %v729_v8  ;;  %v401_v16 = vld [vmem:[%s921_s5 + $0x18] sm:$0xff]  ;;  %v568_v25 = vld [vmem:[%s917_s1] ss:$0 sm:$0xff]  ;;  %v400_v31 = vld [vmem:[%s921_s5 + $0x10] sm:$0xff]  ;;  %s673_s19 = scalar_lea.vmem %s672_s18, 256 }
  0x17   : > { %v825_v0 = vld [vmem:[%s273_s17] sm:$0xff]  ;;  %595 = vmatpush3.msra.mxu0 %v315_v9  ;;  %604 = vmatpush3.msra.mxu1 %v405_v12  ;;  %v399_v32 = vld [vmem:[%s921_s5 + $0x8] sm:$0xff]  ;;  %s667_s17 = scalar_lea.vmem %s504_s9, 128  ;;  %p674_p0 = scmp.lt.s32.totalorder %s504_s9, %s672_s18 }
  0x18   : > { %v278_v1 = vsel %vm277_vm0, %v825_v0, 0.0  ;;  %596 = vmatprep.subr.mxu0 %v729_v8  ;;  %605 = vmatprep.subr.mxu1 %v729_v8  ;;  %v569_v28 = vld [vmem:[%s918_s2] ss:$0 sm:$0xff]  ;;  %p668_p11 = scmp.ne.s32.totalorder %s504_s9, %s667_s17  ;;  %p675_p1 = scmp.lt.s32.totalorder %s673_s19, %s667_s17 }
  0x19   : > { %279 = vadd.xlane.f32.xlu0 %v278_v1  ;;  %597 = vmatpush3.msra.mxu0 %v314_v10  ;;  %v398_v33 = vld [vmem:[%s921_s5] sm:$0xff] }
  0x1a   : > { %598 = vmatprep.subr.mxu0 %v729_v8  ;;  %606 = vmatpush3.msra.mxu1 %v404_v13  ;;  %v570_v34 = vld [vmem:[%s920_s4] ss:$0 sm:$0xff]  ;;  %p669_p12 = pnand %p668_p11, %p810_p5  ;;  %p676_p2 = por %p675_p1, %p674_p0 }
  0x1b   : > { %599 = vmatpush3.msra.mxu0 %v313_v11  ;;  %607 = vmatprep.subr.mxu1 %v729_v8  ;;  %v572_v39 = vld [vmem:[%s922_s6] ss:$0 sm:$0xff] }
  0x1c   : > { %608 = vmatpush3.msra.mxu1 %v403_v14  ;;  %p670_p13 = pneg %p669_p12 }
  0x1d   : > { %609 = vmatprep.subr.mxu1 %v729_v8 }
  0x1e   : > { %610 = vmatpush3.msra.mxu1 %v402_v15  ;;  %p677_p3 = pnand %p676_p2, %p670_p13 }
  0x1f   : > { %611 = vmatprep.subr.mxu1 %v729_v8 }
  0x20   : > { %612 = vmatpush3.msra.mxu1 %v401_v16 }
  0x21   : > { %613 = vmatprep.subr.mxu1 %v729_v8 }
  0x22   : > { %614 = vmatpush3.msra.mxu1 %v400_v31 }
  0x23   : > { %615 = vmatprep.subr.mxu1 %v729_v8 }
  0x24   : > { %616 = vmatpush3.msra.mxu1 %v399_v32 }
  0x25   : > { %617 = vmatprep.subr.mxu1 %v729_v8 }
  0x26   : > { %618 = vmatpush3.msra.mxu1 %v398_v33 }
  0xa2   : > { %v280_v2 = vpop.xlane.xlu0 %279 }
  0xa3   : > { %v282_v3 = vmul.f32 0.03125, %v280_v2 }
  0xa5   : > { %v283_v4 = vsub.f32 %v825_v0, %v282_v3 }
  0xa7   : > { %v284_v5 = vmul.f32 %v283_v4, %v283_v4  ;;  %v302_v26 = vmul.f32 %v568_v25, %v283_v4 }
  0xa9   : > { %v285_v6 = vsel %vm277_vm0, %v284_v5, 0.0 }
  0xaa   : > { %286 = vadd.xlane.f32.xlu0 %v285_v6 }
 0x133   : > { %v287_v17 = vpop.xlane.xlu0 %286 }
 0x134   : > { %v288_v18 = vmul.f32 0.032258064, %v287_v17 }
 0x136   : > { %663 = vrsqrt.f32 %v288_v18  ;;  %vm291_vm2 = vcmp.eq.f32.partialorder %v288_v18, inf  ;;  %v294_v21 = vand.u32 2147483648, %v288_v18  ;;  %vm293_vm3 = vcmp.eq.f32.partialorder %v288_v18, 0.0 }
 0x143   : > { %v664_v19 = vpop.eup %663 }
 0x144   : > { %v290_v20 = vmul.f32 %v664_v19, %v288_v18 }
 0x146   : > { %v292_v22 = vsel %vm291_vm2, %v288_v18, %v290_v20 }
 0x147   : > { %v295_v23 = vsel %vm293_vm3, %v294_v21, %v292_v22 }
 0x148   : > { %v303_v24 = vadd.f32 1e-06, %v295_v23 }
 0x14a   : > { %665 = vrcp.f32 %v303_v24 }
 0x157   : > { %v666_v27 = vpop.eup %665 }
 0x158   : > { %v305_v29 = vmul.f32 %v666_v27, %v302_v26 }
 0x15a   : > { %v312_v30 = vadd.f32 %v569_v28, %v305_v29 }
 0x15c   : > { %601 = vmatmul.mubr.msk.f32.vlgmr.msra.gmra.mxu0 %vm277_vm0, %v312_v30 }
 0x21c   : > { %v393_v35 = vpop.f32.mrf.mxu0 }
 0x21d   : > { %v394_v36 = vadd.f32 %v570_v34, %v393_v35 }
 0x21e   : > { %v602_v37 = vpop.f32.mrf.mxu0 }
 0x21f   : > { %v397_v38 = vmax.f32 %v394_v36, 0.0 }
 0x221   : > { %620 = vmatmul.mubr.msk.f32.vlgmr.msra.gmra.mxu1 %vm413_vm4, %v397_v38 }
 0x2e1   : > { %v483_v40 = vpop.f32.mrf.mxu1 }
 0x2e2   : > { %v484_v41 = vadd.f32 %v572_v39, %v483_v40 }
 0x2e3   : > { %v621_v42 = vpop.f32.mrf.mxu1 }
 0x2e4   : > { %v487_v43 = vadd.f32 %v484_v41, %v825_v0 }
 0x2e6   : > { %488 = vst.msk [vmem:[%s269_s8] sm:$0xff] %vm277_vm0, %v487_v43 }
 0x2e7   : > { %680 = shalt.err (!%p677_p3)
}
 0x2e8   : > { %s681_s21 = scalar_lea.hbm %s501_s15, 128  ;;  %s685_s23 = scalar_lea.hbm %s923_s7, 256 }
 0x2e9   : > { %p682_p4 = scmp.ne.s32.totalorder %s501_s15, %s681_s21  ;;  %p686_p9 = scmp.lt.s32.totalorder %s501_s15, %s923_s7 }
 0x2ea   : > { %p687_p10 = scmp.lt.s32.totalorder %s685_s23, %s681_s21 }
 0x2eb   : > { %p683_p7 = pnand %p682_p4, %p810_p5 }
 0x2ec   : > { %p688_p11 = por %p687_p10, %p686_p9 }
 0x2ed   : > { %p684_p8 = pneg %p683_p7 }
 0x2ef   : > { %p689_p12 = pnand %p688_p11, %p684_p8 }
 0x2f1   : > { %692 = shalt.err (!%p689_p12)
}
 0x2f2   : > { %622 = dma.vmem_to_hbm [thread:$0]  (%p810_p5), %s504_s9, 128, %s501_s15, %s490_s16  }
 0x2f3 PF: > { %p628_p13 = scmp.ge.s32.totalorder %s727_s27, 2  ;;  %s515_s13 = sand.u32 1, %s715_s24  }
 0x2f4   : > { %s516_s14 = scalar_lea.sflag [#allocation3], %s515_s13 }
 0x2f5   : > { %p625_p0 = pnand %p628_p13, %p814_p6 }
 0x2f7   : > { %p626_p1 = pneg %p625_p0 }
 0x2f9   : > { %710 = dma.done.wait (%p626_p1), %s516_s14, 128  }
 0x2fa   : > { %712 = vsyncadd (%p626_p1), %s516_s14, 4294967168  ;;  %p17_p2 = scmp.ge.s32.totalorder %s797_s30, 4   ;;  %s926_s24 = smov %s719_s25 }
 0x2fb   : > { %s927_s25 = smov %s723_s26  ;;  %s928_s26 = smov %s808_s10 }
 0x2fc   : > { %s929_s27 = smov %s797_s30  ;;  %19 = sbr.rel (!%p17_p2) target bundleno = 3 (0x3), region = 83 }
 0x301   :  { %521 = vsyncpa [#allocation3], 1 }
 0x302   :  { %523 = vsyncpa [#allocation3 + $0x1], 1 }

// kernel: decoder_layer_forward.4
= control target key start
LH: loop header
LB: loop body
LE: loop exit
PB: predicated region body
PF: predicated region fallthrough
CT: control target
= control target key end

     0   :  { %s1726_s17 = smov 0   ;;  %s1897_s0 = inlined_call_operand.vmem [shape: f32[2,8,32], index: 0, kind: input, shape index: {}]   ;;  %s1898_s1 = inlined_call_operand.vmem [shape: f32[2,8,32], index: 1, kind: input, shape index: {}]   ;;  %s1899_s2 = inlined_call_operand.vmem [shape: f32[2,1,8], index: 2, kind: input, shape index: {}]   ;;  %s1900_s3 = inlined_call_operand.vmem [shape: f32[1,32], index: 3, kind: input, shape index: {}]   ;;  %s1901_s4 = inlined_call_operand.vmem [shape: f32[1,32], index: 4, kind: input, shape index: {}]   ;;  %s1902_s5 = inlined_call_operand.vmem [shape: f32[32,32], index: 5, kind: input, shape index: {}]   ;;  %s1903_s6 = inlined_call_operand.vmem [shape: f32[1,32], index: 6, kind: input, shape index: {}]   ;;  %s1904_s7 = inlined_call_operand.vmem [shape: f32[32,64], index: 7, kind: input, shape index: {}]   ;;  %s1905_s8 = inlined_call_operand.vmem [shape: f32[1,64], index: 8, kind: input, shape index: {}]   ;;  %s1906_s9 = inlined_call_operand.vmem [shape: f32[32,32], index: 9, kind: input, shape index: {}]   ;;  %s1907_s10 = inlined_call_operand.vmem [shape: f32[1,32], index: 10, kind: input, shape index: {}]   ;;  %s1908_s11 = inlined_call_operand.vmem [shape: f32[2,8,32], index: 11, kind: output, shape index: {}]  }
   0x1 LB: > { %s1470_s18 = sadd.s32 4294967295, %s1651_s17   ;;  %p1474_p0 = scmp.ge.s32.totalorder %s1651_s17, 1  ;;  %s1651_s17 = sphi %s1726_s17, %s21_s17  }
   0x2   : > { %p353_p1 = scmp.lt.s32.totalorder %s1651_s17, 3 }
   0x4   : > { %p354_p2 = pnand %p1474_p0, %p353_p1 }
   0x5   : > { %p398_p3 = scmp.lt.s32.totalorder (!%p354_p2), %s1470_s18, 1  ;;  %s1655_s13 = smov (!%p354_p2), 120  }
   0x6   : > { %357 = sbr.rel (%p354_p2) target bundleno = 1672 (0x688), region = 64  ;;  %s1657_s15 = smov (!%p354_p2), 104  }
   0x7   : > { %s1660_s24 = smov (!%p354_p2), 96   ;;  %s1661_s25 = smov (!%p354_p2), 80  }
   0x8   : > { %s1662_s26 = smov (!%p354_p2), 72   ;;  %s1663_s16 = smov (!%p354_p2), 8  }
   0x9   : > { %s1664_s20 = smov (!%p354_p2), 16   ;;  %s1665_s21 = smov (!%p354_p2), 24  }
   0xb   : > { %s1910_s18 = smov (!%p398_p3, %s1470_s18), 1  ;;  %vm417_vm0 = vcmask 261120   ;;  %v1653_v7 = vmov 0.0   ;;  %v540_v8 = vld [vmem:[%s1904_s7 + $0x18] sm:$0xff]  ;;  %v539_v9 = vld [vmem:[%s1904_s7 + $0x10] sm:$0xff]  ;;  %vm1654_vm1 = vmmov 0   ;;  %v702_v46 = vlaneseq }
   0xc   : > { %s1737_s19 = sshll.u32 %s1910_s18, 3  ;;  %1542 = vmatprep.subr.mxu1 %v1653_v7  ;;  %1531 = vmatprep.subr.mxu0 %v1653_v7  ;;  %v456_v10 = vld [vmem:[%s1902_s5 + $0x18] sm:$0xff]  ;;  %v538_v11 = vld [vmem:[%s1904_s7 + $0x8] sm:$0xff]  ;;  %v455_v12 = vld [vmem:[%s1902_s5 + $0x10] sm:$0xff]  ;;  %vm624_vm4 = vcmask 64512   ;;  %s408_s23 = scalar_lea.vmem %s1899_s2, %s1910_s18  ;;  %v1658_v50 = vmov 0  }
   0xd   : > { %s401_s22 = scalar_lea.vmem %s1897_s0, %s1737_s19  ;;  %1543 = vmatpush3.msra.mxu1 %v540_v8  ;;  %1550 = vmatprep.mubr.msk.f32.mxu1 %vm1654_vm1, %v1653_v7  ;;  %s405_s14 = scalar_lea.vmem %s1898_s1, %s1737_s19  ;;  %v454_v13 = vld [vmem:[%s1902_s5 + $0x8] sm:$0xff]  ;;  %v537_v14 = vld [vmem:[%s1904_s7] sm:$0xff]  ;;  %v703_v48 = vshrl.u32 %v702_v46, 7  ;;  %v1312_v46 = vld [vmem:[%s1906_s9 + $0x10] sm:$0xff]  ;;  %vm1306_vm7 = vcmask 130048   ;;  %vm1308_vm8 = vcmask 195584  }
   0xe   : > { %v1743_v0 = vld [vmem:[%s401_s22] sm:$0xff]  ;;  %1544 = vmatprep.subr.mxu1 %v1653_v7  ;;  %1532 = vmatpush3.msra.mxu0 %v456_v10  ;;  %s1659_s18 = smov 88  }
   0xf   : > { %v418_v1 = vsel %vm417_vm0, %v1743_v0, 0.0  ;;  %1545 = vmatpush3.msra.mxu1 %v539_v9  ;;  %1533 = vmatprep.subr.mxu0 %v1653_v7  ;;  %v414_v15 = vld [vmem:[%s405_s14] sm:$0xff]  ;;  %s1656_s14 = smov 112   ;;  %v704_v49 = vsub.s32 0, %v703_v48 }
  0x10   : > { %419 = vadd.xlane.f32.xlu0 %v418_v1  ;;  %1546 = vmatprep.subr.mxu1 %v1653_v7  ;;  %v453_v16 = vld [vmem:[%s1902_s5] sm:$0xff] }
  0x11   : > { %1534 = vmatpush3.msra.mxu0 %v455_v12  ;;  %1547 = vmatpush3.msra.mxu1 %v538_v11  ;;  %v1478_v25 = vld [vmem:[%s1900_s3] ss:$0 sm:$0xff] }
  0x12   : > { %1535 = vmatprep.subr.mxu0 %v1653_v7  ;;  %1548 = vmatprep.subr.mxu1 %v1653_v7  ;;  %v1479_v28 = vld [vmem:[%s1901_s4] ss:$0 sm:$0xff] }
  0x13   : > { %1536 = vmatpush3.msra.mxu0 %v454_v13  ;;  %1549 = vmatpush3.msra.mxu1 %v537_v14  ;;  %v1482_v31 = vld [vmem:[%s1905_s8] ss:$0 sm:$0xff] }
  0x14   : > { %1537 = vmatprep.subr.mxu0 %v1653_v7  ;;  %1551 = vmatmul.mubr.msk.f32.vlgmr.msra.gmra.mxu1 %vm417_vm0, %v414_v15  ;;  %v1480_v36 = vld [vmem:[%s1903_s6] ss:$0 sm:$0xff] }
  0x15   : > { %1538 = vmatpush3.msra.mxu0 %v453_v16  ;;  %1539 = vmatprep.mubr.msk.f32.mxu0 %vm1654_vm1, %v1653_v7  ;;  %v621_v47 = vld [vmem:[%s408_s23] sm:$0x1] }
  0x16   : > { %1553 = vmatprep.subr.mxu1 %v1653_v7  ;;  %1555 = vmatprep.mubr.msk.f32.mxu1 %vm1654_vm1, %v1653_v7  ;;  %vm623_vm5 = vcmp.eq.f32.partialorder %v621_v47, 0.0  ;;  %v1311_v47 = vld [vmem:[%s1906_s9 + $0x8] sm:$0xff]  ;;  %v1310_v48 = vld [vmem:[%s1906_s9] sm:$0xff] }
  0x17   : > { %1563 = vmatprep.subr.mxu0 %v1653_v7  ;;  %v701_v51 = vsel %vm623_vm5, 1, %v1658_v50 }
  0x18   : > { %v705_v52 = vrot.slane %v701_v51, %v704_v49 }
  0x1a   : > { %vm706_vm6 = vcmp.eq.s32.totalorder %v705_v52, 1 }
  0x99   : > { %v420_v2 = vpop.xlane.xlu0 %419 }
  0x9a   : > { %v422_v3 = vmul.f32 0.03125, %v420_v2 }
  0x9c   : > { %v423_v4 = vsub.f32 %v1743_v0, %v422_v3 }
  0x9e   : > { %v424_v5 = vmul.f32 %v423_v4, %v423_v4  ;;  %v442_v26 = vmul.f32 %v1478_v25, %v423_v4 }
  0xa0   : > { %v425_v6 = vsel %vm417_vm0, %v424_v5, 0.0 }
  0xa1   : > { %426 = vadd.xlane.f32.xlu0 %v425_v6 }
  0xd4   : > { %v617_v32 = vpop.f32.mrf.mxu1 }
  0xd5   : > { %v1806_v33 = vadd.f32 %v1482_v31, %v617_v32 }
  0xd6   : > { %v1552_v34 = vpop.f32.mrf.mxu1 }
  0xd7   : > { %797 = vrot.lane.b32.xlu1 %v1806_v33, %s1655_s13  ;;  %1554 = vmatpush3.xpose.msk.msra.mxu1 %vm624_vm4, %v1806_v33 }
  0xd8   : > { %963 = vrot.lane.b32.xlu0 %v1806_v33, %s1656_s14  ;;  %1558 = vmatprep.subr.mxu1 %v1653_v7 }
  0xdb   : > { %1129 = vrot.lane.b32.xlu1 %v1806_v33, %s1657_s15 }
 0x12a   : > { %v427_v17 = vpop.xlane.xlu0 %426 }
 0x12b   : > { %v428_v18 = vmul.f32 0.032258064, %v427_v17 }
 0x12d   : > { %1625 = vrsqrt.f32 %v428_v18  ;;  %vm431_vm2 = vcmp.eq.f32.partialorder %v428_v18, inf  ;;  %v434_v21 = vand.u32 2147483648, %v428_v18  ;;  %vm433_vm3 = vcmp.eq.f32.partialorder %v428_v18, 0.0 }
 0x13a   : > { %v1626_v19 = vpop.eup %1625 }
 0x13b   : > { %v430_v20 = vmul.f32 %v1626_v19, %v428_v18 }
 0x13d   : > { %v432_v22 = vsel %vm431_vm2, %v428_v18, %v430_v20 }
 0x13e   : > { %v435_v23 = vsel %vm433_vm3, %v434_v21, %v432_v22 }
 0x13f   : > { %v443_v24 = vadd.f32 1e-06, %v435_v23 }
 0x141   : > { %1627 = vrcp.f32 %v443_v24 }
 0x149   : > { %v798_v35 = vpop.permute.xlu1 %797 }
 0x14a   : > { %v964_v43 = vpop.permute.xlu0 %963 }
 0x14d   : > { %v1130_v41 = vpop.permute.xlu1 %1129 }
 0x14e   : > { %v1628_v27 = vpop.eup %1627 }
 0x14f   : > { %v445_v29 = vmul.f32 %v1628_v27, %v442_v26 }
 0x151   : > { %v452_v30 = vadd.f32 %v1479_v28, %v445_v29 }
 0x153   : > { %1540 = vmatmul.mubr.msk.f32.vlgmr.msra.gmra.mxu0 %vm417_vm0, %v452_v30 }
 0x154   : > { %1565 = vmatprep.mubr.msk.f32.mxu0 %vm1654_vm1, %v1653_v7  ;;  %1564 = vmatpush3.xpose.msk.msra.mxu0 %vm624_vm4, %v798_v35 }
 0x155   : > { %1573 = vmatprep.subr.mxu0 %v1653_v7 }
 0x213   : > { %v533_v37 = vpop.f32.mrf.mxu0 }
 0x214   : > { %v534_v38 = vadd.f32 %v1480_v36, %v533_v37 }
 0x215   : > { %v1541_v39 = vpop.f32.mrf.mxu0 }
 0x216   : > { %v622_v40 = vmul.f32 0.35355338, %v534_v38 }
 0x218   : > { %795 = vrot.lane.b32.xlu1 %v622_v40, %s1655_s13  ;;  %1556 = vmatmul.mubr.msk.f32.vlgmr.msra.gmra.mxu1 %vm624_vm4, %v622_v40 }
 0x219   : > { %1560 = vmatprep.mubr.msk.f32.mxu1 %vm1654_vm1, %v1653_v7 }
 0x21c   : > { %961 = vrot.lane.b32.xlu1 %v622_v40, %s1656_s14 }
 0x220   : > { %1127 = vrot.lane.b32.xlu1 %v622_v40, %s1657_s15 }
 0x28a   : > { %v796_v42 = vpop.permute.xlu1 %795 }
 0x28b   : > { %1566 = vmatmul.mubr.msk.f32.vlgmr.msra.gmra.mxu0 %vm624_vm4, %v796_v42 }
 0x28c   : > { %1574 = vmatpush3.xpose.msk.msra.mxu0 %vm624_vm4, %v964_v43  ;;  %1575 = vmatprep.mubr.msk.f32.mxu0 %vm1654_vm1, %v1653_v7 }
 0x28d   : > { %1583 = vmatprep.subr.mxu0 %v1653_v7 }
 0x28e   : > { %v962_v44 = vpop.permute.xlu1 %961 }
 0x28f   : > { %1576 = vmatmul.mubr.msk.f32.vlgmr.msra.gmra.mxu0 %vm624_vm4, %v962_v44 }
 0x290   : > { %1584 = vmatpush3.xpose.msk.msra.mxu0 %vm624_vm4, %v1130_v41  ;;  %1585 = vmatprep.mubr.msk.f32.mxu0 %vm1654_vm1, %v1653_v7 }
 0x291   : > { %1593 = vmatprep.subr.mxu0 %v1653_v7 }
 0x292   : > { %v1128_v45 = vpop.permute.xlu1 %1127 }
 0x293   : > { %1586 = vmatmul.mubr.msk.f32.vlgmr.msra.gmra.mxu0 %vm624_vm4, %v1128_v45  ;;  %v1313_v45 = vld [vmem:[%s1906_s9 + $0x18] sm:$0xff] }
 0x294   : > { %1601 = vmatprep.mubr.msk.f32.mxu0 %vm1654_vm1, %v1653_v7  ;;  %1594 = vmatpush3.msra.mxu0 %v1313_v45 }
 0x295   : > { %1595 = vmatprep.subr.mxu0 %v1653_v7 }
 0x296   : > { %1596 = vmatpush3.msra.mxu0 %v1312_v46 }
 0x297   : > { %1597 = vmatprep.subr.mxu0 %v1653_v7 }
 0x298   : > { %1598 = vmatpush3.msra.mxu0 %v1311_v47 }
 0x299   : > { %1599 = vmatprep.subr.mxu0 %v1653_v7 }
 0x29a   : > { %1600 = vmatpush3.msra.mxu0 %v1310_v48 }
 0x2d8   : > { %v697_v53 = vpop.f32.mrf.mxu1 }
 0x2d9   : > { %v707_v54 = vsel %vm706_vm6, -1e+09, %v697_v53 }
 0x2da   : > { %v1557_v55 = vpop.f32.mrf.mxu1  ;;  %v708_v56 = vsel %vm624_vm4, %v707_v54, -inf }
 0x2db   : > { %709 = vmax.xlane.f32.xlu1 %v708_v56 }
 0x34b   : > { %v869_v57 = vpop.f32.mrf.mxu0 }
 0x34c   : > { %v873_v58 = vsel %vm706_vm6, -1e+09, %v869_v57 }
 0x34d   : > { %v1567_v59 = vpop.f32.mrf.mxu0  ;;  %v874_v60 = vsel %vm624_vm4, %v873_v58, -inf }
 0x34e   : > { %875 = vmax.xlane.f32.xlu0 %v874_v60  ;;  %v1496_v60 = vld [vmem:[%s1907_s10] ss:$0 sm:$0xff] }
 0x34f   : > { %v1035_v61 = vpop.f32.mrf.mxu0 }
 0x350   : > { %v1039_v62 = vsel %vm706_vm6, -1e+09, %v1035_v61 }
 0x351   : > { %v1577_v63 = vpop.f32.mrf.mxu0  ;;  %v1040_v1 = vsel %vm624_vm4, %v1039_v62, -inf }
 0x352   : > { %1041 = vmax.xlane.f32.xlu1 %v1040_v1 }
 0x353   : > { %v1201_v2 = vpop.f32.mrf.mxu0 }
 0x354   : > { %v1205_v3 = vsel %vm706_vm6, -1e+09, %v1201_v2 }
 0x355   : > { %v1587_v4 = vpop.f32.mrf.mxu0  ;;  %v1206_v5 = vsel %vm624_vm4, %v1205_v3, -inf }
 0x356   : > { %1207 = vmax.xlane.f32.xlu1 %v1206_v5 }
 0x364   : > { %v710_v6 = vpop.xlane.xlu1 %709 }
 0x365   : > { %v711_v8 = vsub.f32 %v707_v54, %v710_v6 }
 0x367   : > { %v712_v9 = vmul.f32 1.442695, %v711_v8  ;;  %885 = vrot.lane.b32.xlu1 %v1806_v33, %s1659_s18 }
 0x369   : > { %1629 = vpow2.f32 %v712_v9 }
 0x376   : > { %v1630_v10 = vpop.eup %1629 }
 0x377   : > { %v714_v11 = vsel %vm624_vm4, %v1630_v10, 0.0 }
 0x378   : > { %715 = vadd.xlane.f32.xlu0 %v714_v11 }
 0x38e   : > { %719 = vrot.lane.b32.xlu0 %v1806_v33, %s1660_s24 }
 0x3d7   : > { %v876_v12 = vpop.xlane.xlu0 %875 }
 0x3d8   : > { %v877_v13 = vsub.f32 %v873_v58, %v876_v12 }
 0x3da   : > { %v878_v14 = vmul.f32 1.442695, %v877_v13 }
 0x3db   : > { %v1042_v15 = vpop.xlane.xlu1 %1041 }
 0x3dc   : > { %1631 = vpow2.f32 %v878_v14  ;;  %v1043_v16 = vsub.f32 %v1039_v62, %v1042_v15 }
 0x3de   : > { %v1044_v17 = vmul.f32 1.442695, %v1043_v16 }
 0x3df   : > { %v1208_v18 = vpop.xlane.xlu1 %1207 }
 0x3e0   : > { %1633 = vpow2.f32 %v1044_v17  ;;  %v1209_v19 = vsub.f32 %v1205_v3, %v1208_v18 }
 0x3e2   : > { %v1210_v20 = vmul.f32 1.442695, %v1209_v19 }
 0x3e3   : > { %v886_v31 = vpop.permute.xlu1 %885 }
 0x3e4   : > { %1635 = vpow2.f32 %v1210_v20 }
 0x3e9   : > { %v1632_v21 = vpop.eup %1631 }
 0x3ea   : > { %v880_v22 = vsel %vm624_vm4, %v1632_v21, 0.0 }
 0x3eb   : > { %881 = vadd.xlane.f32.xlu1 %v880_v22 }
 0x3ed   : > { %v1634_v23 = vpop.eup %1633 }
 0x3ee   : > { %v1046_v24 = vsel %vm624_vm4, %v1634_v23, 0.0 }
 0x3ef   : > { %1047 = vadd.xlane.f32.xlu0 %v1046_v24 }
 0x3f1   : > { %v1636_v25 = vpop.eup %1635 }
 0x3f2   : > { %v1212_v26 = vsel %vm624_vm4, %v1636_v25, 0.0 }
 0x3f3   : > { %1213 = vadd.xlane.f32.xlu1 %v1212_v26 }
 0x401   : > { %v716_v27 = vpop.xlane.xlu0 %715 }
 0x402   : > { %1637 = vrcp.f32 %v716_v27 }
 0x404   : > { %1051 = vrot.lane.b32.xlu1 %v1806_v33, %s1661_s25  ;;  %s412_s25 = scalar_lea.vmem %s1908_s11, %s1737_s19 }
 0x405   : > { %1217 = vrot.lane.b32.xlu0 %v1806_v33, %s1662_s26  ;;  %v720_v28 = vpop.permute.xlu0 %719 }
 0x406   : > { %1559 = vmatpush3.msra.mxu1 %v720_v28 }
 0x407   : > { %1568 = vmatprep.subr.mxu1 %v1653_v7 }
 0x40f   : > { %v1638_v29 = vpop.eup %1637 }
 0x410   : > { %v718_v30 = vmul.f32 %v1638_v29, %v1630_v10 }
 0x412   : > { %1561 = vmatmul.mubr.msk.f32.vlgmr.msra.gmra.mxu1 %vm624_vm4, %v718_v30 }
 0x413   : > { %1569 = vmatpush3.msra.mxu1 %v886_v31  ;;  %1570 = vmatprep.mubr.msk.f32.mxu1 %vm1654_vm1, %v1653_v7 }
 0x414   : > { %1578 = vmatprep.subr.mxu1 %v1653_v7 }
 0x474   : > { %v882_v32 = vpop.xlane.xlu1 %881 }
 0x475   : > { %1639 = vrcp.f32 %v882_v32 }
 0x478   : > { %v1048_v34 = vpop.xlane.xlu0 %1047 }
 0x479   : > { %1641 = vrcp.f32 %v1048_v34 }
 0x47c   : > { %v1214_v33 = vpop.xlane.xlu1 %1213  ;;  %v1218_v40 = vpop.permute.xlu0 %1217 }
 0x47d   : > { %1643 = vrcp.f32 %v1214_v33 }
 0x480   : > { %v1052_v37 = vpop.permute.xlu1 %1051 }
 0x482   : > { %v1640_v35 = vpop.eup %1639 }
 0x483   : > { %v884_v36 = vmul.f32 %v1640_v35, %v1632_v21 }
 0x485   : > { %1571 = vmatmul.mubr.msk.f32.vlgmr.msra.gmra.mxu1 %vm624_vm4, %v884_v36 }
 0x486   : > { %v1642_v38 = vpop.eup %1641  ;;  %1579 = vmatpush3.msra.mxu1 %v1052_v37  ;;  %1580 = vmatprep.mubr.msk.f32.mxu1 %vm1654_vm1, %v1653_v7 }
 0x487   : > { %1588 = vmatprep.subr.mxu1 %v1653_v7  ;;  %v1050_v39 = vmul.f32 %v1642_v38, %v1634_v23 }
 0x489   : > { %1581 = vmatmul.mubr.msk.f32.vlgmr.msra.gmra.mxu1 %vm624_vm4, %v1050_v39 }
 0x48a   : > { %v1644_v41 = vpop.eup %1643  ;;  %1589 = vmatpush3.msra.mxu1 %v1218_v40  ;;  %1590 = vmatprep.mubr.msk.f32.mxu1 %vm1654_vm1, %v1653_v7 }
 0x48b   : > { %v1216_v42 = vmul.f32 %v1644_v41, %v1636_v25 }
 0x48d   : > { %1591 = vmatmul.mubr.msk.f32.vlgmr.msra.gmra.mxu1 %vm624_vm4, %v1216_v42 }
 0x4d2   : > { %v791_v43 = vpop.f32.mrf.mxu1 }
 0x4d4   : > { %v1562_v44 = vpop.f32.mrf.mxu1 }
 0x545   : > { %v957_v49 = vpop.f32.mrf.mxu1 }
 0x546   : > { %1294 = vrot.lane.b32.xlu1 %v957_v49, %s1663_s16 }
 0x547   : > { %v1572_v50 = vpop.f32.mrf.mxu1 }
 0x549   : > { %v1123_v51 = vpop.f32.mrf.mxu1 }
 0x54a   : > { %1298 = vrot.lane.b32.xlu0 %v1123_v51, %s1664_s20 }
 0x54b   : > { %v1582_v52 = vpop.f32.mrf.mxu1 }
 0x54d   : > { %v1289_v53 = vpop.f32.mrf.mxu1 }
 0x54e   : > { %1302 = vrot.lane.b32.xlu1 %v1289_v53, %s1665_s21 }
 0x54f   : > { %v1592_v54 = vpop.f32.mrf.mxu1 }
 0x5b8   : > { %v1295_v55 = vpop.permute.xlu1 %1294 }
 0x5b9   : > { %v1305_v56 = vsel %vm624_vm4, %v791_v43, %v1295_v55 }
 0x5bc   : > { %v1299_v7 = vpop.permute.xlu0 %1298 }
 0x5bd   : > { %v1307_v57 = vsel %vm1306_vm7, %v1305_v56, %v1299_v7 }
 0x5c0   : > { %v1303_v58 = vpop.permute.xlu1 %1302 }
 0x5c1   : > { %v1309_v59 = vsel %vm1308_vm8, %v1307_v57, %v1303_v58 }
 0x5c2   : > { %1602 = vmatmul.mubr.msk.f32.vlgmr.msra.gmra.mxu0 %vm417_vm0, %v1309_v59 }
 0x682   : > { %v1390_v61 = vpop.f32.mrf.mxu0 }
 0x683   : > { %v1391_v62 = vadd.f32 %v1496_v60, %v1390_v61 }
 0x684   : > { %v1603_v63 = vpop.f32.mrf.mxu0 }
 0x685   : > { %v1394_v1 = vadd.f32 %v1391_v62, %v1743_v0 }
 0x687   : > { %1395 = vst.msk [vmem:[%s412_s25] sm:$0xff] %vm417_vm0, %v1394_v1 }
 0x688 PF: > { %s21_s17 = sadd.s32 1, %s1651_s17  }
 0x689   : > { %p18_p4 = scmp.ge.s32.totalorder %s21_s17, 4  }
 0x68b   :  { %20 = sbr.rel (!%p18_p4) target bundleno = 1 (0x1), region = 100 }

</bundles_post_ra>
